<compile_context>
chip_gen: v6e
topology: v6e:2x2x1
jax: 0.10.0
libtpu: 0.0.40
codegen_flags: <defaults>
</compile_context>

<pallas_src>
import functools

import jax
import jax.numpy as jnp
from jax.experimental import pallas as pl
from jax.experimental.pallas import tpu as pltpu


def _fcu_up_kernel(x_ref, w_ref, b_ref, r_ref, o_ref, *, bblk, H, W):
    """One grid step = `bblk` images.

    x_ref: (bblk*H*W, Cin)       bf16  tokens (cls dropped, batch-stacked)
    w_ref: (Cout, Cin)           bf16  BN-folded 1x1 conv weight
    b_ref: (Cout, 1)             f32   BN-folded bias
    r_ref: (W, s*Ws)             f32   0/1 width-replication operator
    o_ref: (bblk, Cout, H, s*Ws) f32   == NCHW (bblk, Cout, H*s, W*s) memory
    """
    HW = H * W
    # 1x1 conv + folded BN for ALL bblk images in one channel-major MXU matmul:
    #   (Cout, Cin) x (bblk*HW, Cin)^T -> (Cout, bblk*HW), f32 accumulate.
    y = jax.lax.dot_general(
        w_ref[...], x_ref[...],
        dimension_numbers=(((1,), (1,)), ((), ())),
        preferred_element_type=jnp.float32)
    y = jnp.maximum(y + b_ref[...], 0.0)          # folded-BN bias + ReLU

    r = r_ref[...]                                # (W, s*Ws) 0/1 operator
    for bb in range(bblk):                        # static, small
        for h in range(H):                        # static, small
            lo = bb * HW + h * W
            y_h = y[:, lo:lo + W]                 # (Cout, W) static lane slice
            # Width replication on the MXU; height replication is free: row h
            # of the (H, s*Ws) output layout already holds all s output rows.
            z = jnp.dot(y_h, r, preferred_element_type=jnp.float32)
            o_ref[bb, :, h, :] = z.astype(o_ref.dtype)


@functools.partial(jax.jit, static_argnums=(2, 3, 4, 5))
def fcu_up(x, params, H, W, up_stride, batch_block=1):
    """x: (B, 1 + H*W, Cin) patch embeddings (cls token at index 0)."""
    B, N, Cin = x.shape
    HW = H * W
    assert N == 1 + HW, "expected cls token at index 0"
    assert B % batch_block == 0, "batch_block must divide the batch"
    w, b, gamma, beta, mean, var = params         # w: (Cout, Cin)
    Cout = w.shape[0]
    s = up_stride
    Ws = W * s
    eps = 1e-6                                    # matches nn.BatchNorm2d(eps=1e-06)

    # --- fold BatchNorm2d (inference / running stats) into the 1x1 conv -----
    scale = gamma * jax.lax.rsqrt(var + eps)                        # (Cout,)
    w_fold = (w * scale[:, None]).astype(jnp.bfloat16)              # (Cout, Cin)
    b_fold = ((b - mean) * scale + beta).reshape(Cout, 1).astype(jnp.float32)

    # --- drop cls token, cast to bf16, stack batches: ONE fused XLA pass ----
    x_tok = x[:, 1:, :].astype(jnp.bfloat16).reshape(B * HW, Cin)

    # --- tiny 0/1 width-replication operator: R[w, dh*Ws + w*s + dw] = 1 ----
    j = jnp.arange(s * Ws, dtype=jnp.int32)
    r_op = ((j % Ws) // s ==
            jnp.arange(W, dtype=jnp.int32)[:, None]).astype(jnp.float32)

    conv_flops = 2 * B * HW * Cin * Cout
    repl_flops = 2 * B * H * Cout * W * (s * Ws)
    bytes_accessed = (2 * B * HW * Cin + 2 * Cout * Cin + 4 * Cout
                      + 4 * W * s * Ws + 4 * B * Cout * H * s * Ws)

    out = pl.pallas_call(
        functools.partial(_fcu_up_kernel, bblk=batch_block, H=H, W=W),
        out_shape=jax.ShapeDtypeStruct((B, Cout, H, s * Ws), jnp.float32),
        grid=(B // batch_block,),
        in_specs=[
            pl.BlockSpec((batch_block * HW, Cin), lambda i: (i, 0)),   # tokens
            pl.BlockSpec((Cout, Cin), lambda i: (0, 0)),               # weight
            pl.BlockSpec((Cout, 1), lambda i: (0, 0)),                 # bias
            pl.BlockSpec((W, s * Ws), lambda i: (0, 0)),               # repl op
        ],
        out_specs=pl.BlockSpec((batch_block, Cout, H, s * Ws),
                               lambda i: (i, 0, 0, 0)),
        compiler_params=pltpu.CompilerParams(
            dimension_semantics=("parallel",),        # dual-TC sharding on v7x
            vmem_limit_bytes=32 * 1024 * 1024),
        cost_estimate=pl.CostEstimate(flops=conv_flops + repl_flops,
                                      transcendentals=0,
                                      bytes_accessed=bytes_accessed),
    )(x_tok, w_fold, b_fold, r_op)

    # (B, Cout, H, s*Ws) and (B, Cout, H*s, W*s) share the same memory layout:
    # metadata-only reshape, no pass over the upsampled tensor.
    return out.reshape(B, Cout, H * s, Ws)


def init_params(key, inplanes, outplanes):
    # Deterministic synthetic parameters. w is the 1x1 conv weight (Cout, Cin)
    # == conv_weight[:, :, 0, 0] in PyTorch layout.
    k1, k2, k3, k4, k5, k6 = jax.random.split(key, 6)
    w = 0.1 * jax.random.normal(k1, (outplanes, inplanes), jnp.float32)
    b = 0.1 * jax.random.normal(k2, (outplanes,), jnp.float32)
    gamma = 1.0 + 0.1 * jax.random.normal(k3, (outplanes,), jnp.float32)
    beta = 0.1 * jax.random.normal(k4, (outplanes,), jnp.float32)
    mean = 0.1 * jax.random.normal(k5, (outplanes,), jnp.float32)
    var = 1.0 + jnp.abs(jax.random.normal(k6, (outplanes,), jnp.float32))
    return w, b, gamma, beta, mean, var


def fcu_up_reference(x, params, H, W, up_stride, eps=1e-6):
    # Pure-JAX f32 reference mirroring PyTorch FCUUp.forward (BN inference mode).
    w, b, gamma, beta, mean, var = params
    B, N, Cin = x.shape
    x_r = jnp.transpose(x[:, 1:, :], (0, 2, 1)).reshape(B, Cin, H, W)
    y = jnp.einsum('bchw,oc->bohw', x_r, w) + b[None, :, None, None]
    inv = jax.lax.rsqrt(var + eps)
    y = (y - mean[None, :, None, None]) * inv[None, :, None, None] \
        * gamma[None, :, None, None] + beta[None, :, None, None]
    y = jnp.maximum(y, 0.0)
    return jnp.repeat(jnp.repeat(y, up_stride, axis=2), up_stride, axis=3)


if __name__ == "__main__":
    B, inplanes, outplanes = 4, 32, 16
    H = W = 8
    up_stride = 2
    batch_block = 2          # 2 images per grid step -> 2 grid steps for B=4

    key = jax.random.PRNGKey(0)
    kx, kp = jax.random.split(key)
    x = jax.random.normal(kx, (B, 1 + H * W, inplanes), jnp.float32)
    params = init_params(kp, inplanes, outplanes)

    out = fcu_up(x, params, H, W, up_stride, batch_block)
    out = jax.block_until_ready(out)

    ref = fcu_up_reference(x, params, H, W, up_stride)
    assert out.shape == (B, outplanes, H * up_stride, W * up_stride), out.shape
    # Inputs are cast to bf16 inside the fused path -> bf16-level tolerance.
    assert jnp.allclose(out, ref, atol=3e-2, rtol=3e-2), "mismatch vs reference"

    print("KERNEL_OK")
</pallas_src>

<mosaic_0001>
module attributes {stable_mosaic.version = 11 : i64} {
  func.func @_fcu_up_kernel(%arg0: i32, %arg1: memref<128x32xbf16, #tpu.memory_space<vmem>>, %arg2: memref<16x32xbf16, #tpu.memory_space<vmem>>, %arg3: memref<16x1xf32, #tpu.memory_space<vmem>>, %arg4: memref<8x32xf32, #tpu.memory_space<vmem>>, %arg5: memref<2x16x8x32xf32, #tpu.memory_space<vmem>>) attributes {dimension_semantics = [#tpu.dimension_semantics<parallel>], iteration_bounds = array<i64: 2>, scalar_prefetch = 0 : i64, scratch_operands = 0 : i64, tpu.core_type = #tpu.core_type<tc>, window_params = [{transform_indices = @transform_0, window_bounds = array<i64: 128, 32>}, {pipeline_mode = #tpu.pipeline_mode<synchronous>, transform_indices = @transform_1, window_bounds = array<i64: 16, 32>}, {pipeline_mode = #tpu.pipeline_mode<synchronous>, transform_indices = @transform_2, window_bounds = array<i64: 16, 1>}, {pipeline_mode = #tpu.pipeline_mode<synchronous>, transform_indices = @transform_3, window_bounds = array<i64: 8, 32>}, {transform_indices = @transform_4, window_bounds = array<i64: 2, 16, 8, 32>}]} {
    %c0 = arith.constant 0 : index
    %c0_0 = arith.constant 0 : index
    %0 = vector.load %arg2[%c0, %c0_0] : memref<16x32xbf16, #tpu.memory_space<vmem>>, vector<16x32xbf16>
    %c0_1 = arith.constant 0 : index
    %c0_2 = arith.constant 0 : index
    %1 = vector.load %arg1[%c0_1, %c0_2] : memref<128x32xbf16, #tpu.memory_space<vmem>>, vector<128x32xbf16>
    %cst = arith.constant dense<0.000000e+00> : vector<16x128xf32>
    %2 = tpu.matmul %0, %1, %cst {dimension_numbers = #tpu.dot_dimension_numbers<[1], [1], [0], [0], [0, 0, 1, 0], [], []>} : vector<16x32xbf16>, vector<128x32xbf16>, vector<16x128xf32> -> vector<16x128xf32>
    %c0_3 = arith.constant 0 : index
    %c0_4 = arith.constant 0 : index
    %3 = vector.load %arg3[%c0_3, %c0_4] : memref<16x1xf32, #tpu.memory_space<vmem>>, vector<16x1xf32>
    %4 = vector.broadcast %3 : vector<16x1xf32> to vector<16x128xf32>
    %5 = arith.addf %2, %4 : vector<16x128xf32>
    %cst_5 = arith.constant 0.000000e+00 : f32
    %6 = vector.broadcast %cst_5 : f32 to vector<16x128xf32>
    %7 = arith.maximumf %5, %6 : vector<16x128xf32>
    %c0_6 = arith.constant 0 : index
    %c0_7 = arith.constant 0 : index
    %8 = vector.load %arg4[%c0_6, %c0_7] : memref<8x32xf32, #tpu.memory_space<vmem>>, vector<8x32xf32>
    %9 = vector.extract_strided_slice %7 {offsets = [0, 0], sizes = [16, 8], strides = [1, 1]} : vector<16x128xf32> to vector<16x8xf32>
    %cst_8 = arith.constant dense<0.000000e+00> : vector<16x32xf32>
    %10 = tpu.matmul %9, %8, %cst_8 {dimension_numbers = #tpu.dot_dimension_numbers<[1], [0], [0], [1], [0, 0, 1, 1], [], []>} : vector<16x8xf32>, vector<8x32xf32>, vector<16x32xf32> -> vector<16x32xf32>
    %c0_9 = arith.constant 0 : index
    %c0_10 = arith.constant 0 : index
    %c0_11 = arith.constant 0 : index
    %c0_12 = arith.constant 0 : index
    %11 = vector.load %arg5[%c0_9, %c0_10, %c0_11, %c0_12] : memref<2x16x8x32xf32, #tpu.memory_space<vmem>>, vector<1x16x1x32xf32>
    %12 = vector.shape_cast %11 : vector<1x16x1x32xf32> to vector<16x32xf32>
    %13 = vector.shape_cast %10 : vector<16x32xf32> to vector<1x16x1x32xf32>
    tpu.vector_store %arg5[%c0_9, %c0_10, %c0_11, %c0_12], %13 {strides = array<i32>} : memref<2x16x8x32xf32, #tpu.memory_space<vmem>>, vector<1x16x1x32xf32>,
    %14 = vector.extract_strided_slice %7 {offsets = [0, 8], sizes = [16, 8], strides = [1, 1]} : vector<16x128xf32> to vector<16x8xf32>
    %cst_13 = arith.constant dense<0.000000e+00> : vector<16x32xf32>
    %15 = tpu.matmul %14, %8, %cst_13 {dimension_numbers = #tpu.dot_dimension_numbers<[1], [0], [0], [1], [0, 0, 1, 1], [], []>} : vector<16x8xf32>, vector<8x32xf32>, vector<16x32xf32> -> vector<16x32xf32>
    %c0_14 = arith.constant 0 : index
    %c0_15 = arith.constant 0 : index
    %c1 = arith.constant 1 : index
    %c0_16 = arith.constant 0 : index
    %16 = vector.load %arg5[%c0_14, %c0_15, %c1, %c0_16] : memref<2x16x8x32xf32, #tpu.memory_space<vmem>>, vector<1x16x1x32xf32>
    %17 = vector.shape_cast %16 : vector<1x16x1x32xf32> to vector<16x32xf32>
    %18 = vector.shape_cast %15 : vector<16x32xf32> to vector<1x16x1x32xf32>
    tpu.vector_store %arg5[%c0_14, %c0_15, %c1, %c0_16], %18 {strides = array<i32>} : memref<2x16x8x32xf32, #tpu.memory_space<vmem>>, vector<1x16x1x32xf32>,
    %19 = vector.extract_strided_slice %7 {offsets = [0, 16], sizes = [16, 8], strides = [1, 1]} : vector<16x128xf32> to vector<16x8xf32>
    %cst_17 = arith.constant dense<0.000000e+00> : vector<16x32xf32>
    %20 = tpu.matmul %19, %8, %cst_17 {dimension_numbers = #tpu.dot_dimension_numbers<[1], [0], [0], [1], [0, 0, 1, 1], [], []>} : vector<16x8xf32>, vector<8x32xf32>, vector<16x32xf32> -> vector<16x32xf32>
    %c0_18 = arith.constant 0 : index
    %c0_19 = arith.constant 0 : index
    %c2 = arith.constant 2 : index
    %c0_20 = arith.constant 0 : index
    %21 = vector.load %arg5[%c0_18, %c0_19, %c2, %c0_20] : memref<2x16x8x32xf32, #tpu.memory_space<vmem>>, vector<1x16x1x32xf32>
    %22 = vector.shape_cast %21 : vector<1x16x1x32xf32> to vector<16x32xf32>
    %23 = vector.shape_cast %20 : vector<16x32xf32> to vector<1x16x1x32xf32>
    tpu.vector_store %arg5[%c0_18, %c0_19, %c2, %c0_20], %23 {strides = array<i32>} : memref<2x16x8x32xf32, #tpu.memory_space<vmem>>, vector<1x16x1x32xf32>,
    %24 = vector.extract_strided_slice %7 {offsets = [0, 24], sizes = [16, 8], strides = [1, 1]} : vector<16x128xf32> to vector<16x8xf32>
    %cst_21 = arith.constant dense<0.000000e+00> : vector<16x32xf32>
    %25 = tpu.matmul %24, %8, %cst_21 {dimension_numbers = #tpu.dot_dimension_numbers<[1], [0], [0], [1], [0, 0, 1, 1], [], []>} : vector<16x8xf32>, vector<8x32xf32>, vector<16x32xf32> -> vector<16x32xf32>
    %c0_22 = arith.constant 0 : index
    %c0_23 = arith.constant 0 : index
    %c3 = arith.constant 3 : index
    %c0_24 = arith.constant 0 : index
    %26 = vector.load %arg5[%c0_22, %c0_23, %c3, %c0_24] : memref<2x16x8x32xf32, #tpu.memory_space<vmem>>, vector<1x16x1x32xf32>
    %27 = vector.shape_cast %26 : vector<1x16x1x32xf32> to vector<16x32xf32>
    %28 = vector.shape_cast %25 : vector<16x32xf32> to vector<1x16x1x32xf32>
    tpu.vector_store %arg5[%c0_22, %c0_23, %c3, %c0_24], %28 {strides = array<i32>} : memref<2x16x8x32xf32, #tpu.memory_space<vmem>>, vector<1x16x1x32xf32>,
    %29 = vector.extract_strided_slice %7 {offsets = [0, 32], sizes = [16, 8], strides = [1, 1]} : vector<16x128xf32> to vector<16x8xf32>
    %cst_25 = arith.constant dense<0.000000e+00> : vector<16x32xf32>
    %30 = tpu.matmul %29, %8, %cst_25 {dimension_numbers = #tpu.dot_dimension_numbers<[1], [0], [0], [1], [0, 0, 1, 1], [], []>} : vector<16x8xf32>, vector<8x32xf32>, vector<16x32xf32> -> vector<16x32xf32>
    %c0_26 = arith.constant 0 : index
    %c0_27 = arith.constant 0 : index
    %c4 = arith.constant 4 : index
    %c0_28 = arith.constant 0 : index
    %31 = vector.load %arg5[%c0_26, %c0_27, %c4, %c0_28] : memref<2x16x8x32xf32, #tpu.memory_space<vmem>>, vector<1x16x1x32xf32>
    %32 = vector.shape_cast %31 : vector<1x16x1x32xf32> to vector<16x32xf32>
    %33 = vector.shape_cast %30 : vector<16x32xf32> to vector<1x16x1x32xf32>
    tpu.vector_store %arg5[%c0_26, %c0_27, %c4, %c0_28], %33 {strides = array<i32>} : memref<2x16x8x32xf32, #tpu.memory_space<vmem>>, vector<1x16x1x32xf32>,
    %34 = vector.extract_strided_slice %7 {offsets = [0, 40], sizes = [16, 8], strides = [1, 1]} : vector<16x128xf32> to vector<16x8xf32>
    %cst_29 = arith.constant dense<0.000000e+00> : vector<16x32xf32>
    %35 = tpu.matmul %34, %8, %cst_29 {dimension_numbers = #tpu.dot_dimension_numbers<[1], [0], [0], [1], [0, 0, 1, 1], [], []>} : vector<16x8xf32>, vector<8x32xf32>, vector<16x32xf32> -> vector<16x32xf32>
    %c0_30 = arith.constant 0 : index
    %c0_31 = arith.constant 0 : index
    %c5 = arith.constant 5 : index
    %c0_32 = arith.constant 0 : index
    %36 = vector.load %arg5[%c0_30, %c0_31, %c5, %c0_32] : memref<2x16x8x32xf32, #tpu.memory_space<vmem>>, vector<1x16x1x32xf32>
    %37 = vector.shape_cast %36 : vector<1x16x1x32xf32> to vector<16x32xf32>
    %38 = vector.shape_cast %35 : vector<16x32xf32> to vector<1x16x1x32xf32>
    tpu.vector_store %arg5[%c0_30, %c0_31, %c5, %c0_32], %38 {strides = array<i32>} : memref<2x16x8x32xf32, #tpu.memory_space<vmem>>, vector<1x16x1x32xf32>,
    %39 = vector.extract_strided_slice %7 {offsets = [0, 48], sizes = [16, 8], strides = [1, 1]} : vector<16x128xf32> to vector<16x8xf32>
    %cst_33 = arith.constant dense<0.000000e+00> : vector<16x32xf32>
    %40 = tpu.matmul %39, %8, %cst_33 {dimension_numbers = #tpu.dot_dimension_numbers<[1], [0], [0], [1], [0, 0, 1, 1], [], []>} : vector<16x8xf32>, vector<8x32xf32>, vector<16x32xf32> -> vector<16x32xf32>
    %c0_34 = arith.constant 0 : index
    %c0_35 = arith.constant 0 : index
    %c6 = arith.constant 6 : index
    %c0_36 = arith.constant 0 : index
    %41 = vector.load %arg5[%c0_34, %c0_35, %c6, %c0_36] : memref<2x16x8x32xf32, #tpu.memory_space<vmem>>, vector<1x16x1x32xf32>
    %42 = vector.shape_cast %41 : vector<1x16x1x32xf32> to vector<16x32xf32>
    %43 = vector.shape_cast %40 : vector<16x32xf32> to vector<1x16x1x32xf32>
    tpu.vector_store %arg5[%c0_34, %c0_35, %c6, %c0_36], %43 {strides = array<i32>} : memref<2x16x8x32xf32, #tpu.memory_space<vmem>>, vector<1x16x1x32xf32>,
    %44 = vector.extract_strided_slice %7 {offsets = [0, 56], sizes = [16, 8], strides = [1, 1]} : vector<16x128xf32> to vector<16x8xf32>
    %cst_37 = arith.constant dense<0.000000e+00> : vector<16x32xf32>
    %45 = tpu.matmul %44, %8, %cst_37 {dimension_numbers = #tpu.dot_dimension_numbers<[1], [0], [0], [1], [0, 0, 1, 1], [], []>} : vector<16x8xf32>, vector<8x32xf32>, vector<16x32xf32> -> vector<16x32xf32>
    %c0_38 = arith.constant 0 : index
    %c0_39 = arith.constant 0 : index
    %c7 = arith.constant 7 : index
    %c0_40 = arith.constant 0 : index
    %46 = vector.load %arg5[%c0_38, %c0_39, %c7, %c0_40] : memref<2x16x8x32xf32, #tpu.memory_space<vmem>>, vector<1x16x1x32xf32>
    %47 = vector.shape_cast %46 : vector<1x16x1x32xf32> to vector<16x32xf32>
    %48 = vector.shape_cast %45 : vector<16x32xf32> to vector<1x16x1x32xf32>
    tpu.vector_store %arg5[%c0_38, %c0_39, %c7, %c0_40], %48 {strides = array<i32>} : memref<2x16x8x32xf32, #tpu.memory_space<vmem>>, vector<1x16x1x32xf32>,
    %49 = vector.extract_strided_slice %7 {offsets = [0, 64], sizes = [16, 8], strides = [1, 1]} : vector<16x128xf32> to vector<16x8xf32>
    %cst_41 = arith.constant dense<0.000000e+00> : vector<16x32xf32>
    %50 = tpu.matmul %49, %8, %cst_41 {dimension_numbers = #tpu.dot_dimension_numbers<[1], [0], [0], [1], [0, 0, 1, 1], [], []>} : vector<16x8xf32>, vector<8x32xf32>, vector<16x32xf32> -> vector<16x32xf32>
    %c1_42 = arith.constant 1 : index
    %c0_43 = arith.constant 0 : index
    %c0_44 = arith.constant 0 : index
    %c0_45 = arith.constant 0 : index
    %51 = vector.load %arg5[%c1_42, %c0_43, %c0_44, %c0_45] : memref<2x16x8x32xf32, #tpu.memory_space<vmem>>, vector<1x16x1x32xf32>
    %52 = vector.shape_cast %51 : vector<1x16x1x32xf32> to vector<16x32xf32>
    %53 = vector.shape_cast %50 : vector<16x32xf32> to vector<1x16x1x32xf32>
    tpu.vector_store %arg5[%c1_42, %c0_43, %c0_44, %c0_45], %53 {strides = array<i32>} : memref<2x16x8x32xf32, #tpu.memory_space<vmem>>, vector<1x16x1x32xf32>,
    %54 = vector.extract_strided_slice %7 {offsets = [0, 72], sizes = [16, 8], strides = [1, 1]} : vector<16x128xf32> to vector<16x8xf32>
    %cst_46 = arith.constant dense<0.000000e+00> : vector<16x32xf32>
    %55 = tpu.matmul %54, %8, %cst_46 {dimension_numbers = #tpu.dot_dimension_numbers<[1], [0], [0], [1], [0, 0, 1, 1], [], []>} : vector<16x8xf32>, vector<8x32xf32>, vector<16x32xf32> -> vector<16x32xf32>
    %c1_47 = arith.constant 1 : index
    %c0_48 = arith.constant 0 : index
    %c1_49 = arith.constant 1 : index
    %c0_50 = arith.constant 0 : index
    %56 = vector.load %arg5[%c1_47, %c0_48, %c1_49, %c0_50] : memref<2x16x8x32xf32, #tpu.memory_space<vmem>>, vector<1x16x1x32xf32>
    %57 = vector.shape_cast %56 : vector<1x16x1x32xf32> to vector<16x32xf32>
    %58 = vector.shape_cast %55 : vector<16x32xf32> to vector<1x16x1x32xf32>
    tpu.vector_store %arg5[%c1_47, %c0_48, %c1_49, %c0_50], %58 {strides = array<i32>} : memref<2x16x8x32xf32, #tpu.memory_space<vmem>>, vector<1x16x1x32xf32>,
    %59 = vector.extract_strided_slice %7 {offsets = [0, 80], sizes = [16, 8], strides = [1, 1]} : vector<16x128xf32> to vector<16x8xf32>
    %cst_51 = arith.constant dense<0.000000e+00> : vector<16x32xf32>
    %60 = tpu.matmul %59, %8, %cst_51 {dimension_numbers = #tpu.dot_dimension_numbers<[1], [0], [0], [1], [0, 0, 1, 1], [], []>} : vector<16x8xf32>, vector<8x32xf32>, vector<16x32xf32> -> vector<16x32xf32>
    %c1_52 = arith.constant 1 : index
    %c0_53 = arith.constant 0 : index
    %c2_54 = arith.constant 2 : index
    %c0_55 = arith.constant 0 : index
    %61 = vector.load %arg5[%c1_52, %c0_53, %c2_54, %c0_55] : memref<2x16x8x32xf32, #tpu.memory_space<vmem>>, vector<1x16x1x32xf32>
    %62 = vector.shape_cast %61 : vector<1x16x1x32xf32> to vector<16x32xf32>
    %63 = vector.shape_cast %60 : vector<16x32xf32> to vector<1x16x1x32xf32>
    tpu.vector_store %arg5[%c1_52, %c0_53, %c2_54, %c0_55], %63 {strides = array<i32>} : memref<2x16x8x32xf32, #tpu.memory_space<vmem>>, vector<1x16x1x32xf32>,
    %64 = vector.extract_strided_slice %7 {offsets = [0, 88], sizes = [16, 8], strides = [1, 1]} : vector<16x128xf32> to vector<16x8xf32>
    %cst_56 = arith.constant dense<0.000000e+00> : vector<16x32xf32>
    %65 = tpu.matmul %64, %8, %cst_56 {dimension_numbers = #tpu.dot_dimension_numbers<[1], [0], [0], [1], [0, 0, 1, 1], [], []>} : vector<16x8xf32>, vector<8x32xf32>, vector<16x32xf32> -> vector<16x32xf32>
    %c1_57 = arith.constant 1 : index
    %c0_58 = arith.constant 0 : index
    %c3_59 = arith.constant 3 : index
    %c0_60 = arith.constant 0 : index
    %66 = vector.load %arg5[%c1_57, %c0_58, %c3_59, %c0_60] : memref<2x16x8x32xf32, #tpu.memory_space<vmem>>, vector<1x16x1x32xf32>
    %67 = vector.shape_cast %66 : vector<1x16x1x32xf32> to vector<16x32xf32>
    %68 = vector.shape_cast %65 : vector<16x32xf32> to vector<1x16x1x32xf32>
    tpu.vector_store %arg5[%c1_57, %c0_58, %c3_59, %c0_60], %68 {strides = array<i32>} : memref<2x16x8x32xf32, #tpu.memory_space<vmem>>, vector<1x16x1x32xf32>,
    %69 = vector.extract_strided_slice %7 {offsets = [0, 96], sizes = [16, 8], strides = [1, 1]} : vector<16x128xf32> to vector<16x8xf32>
    %cst_61 = arith.constant dense<0.000000e+00> : vector<16x32xf32>
    %70 = tpu.matmul %69, %8, %cst_61 {dimension_numbers = #tpu.dot_dimension_numbers<[1], [0], [0], [1], [0, 0, 1, 1], [], []>} : vector<16x8xf32>, vector<8x32xf32>, vector<16x32xf32> -> vector<16x32xf32>
    %c1_62 = arith.constant 1 : index
    %c0_63 = arith.constant 0 : index
    %c4_64 = arith.constant 4 : index
    %c0_65 = arith.constant 0 : index
    %71 = vector.load %arg5[%c1_62, %c0_63, %c4_64, %c0_65] : memref<2x16x8x32xf32, #tpu.memory_space<vmem>>, vector<1x16x1x32xf32>
    %72 = vector.shape_cast %71 : vector<1x16x1x32xf32> to vector<16x32xf32>
    %73 = vector.shape_cast %70 : vector<16x32xf32> to vector<1x16x1x32xf32>
    tpu.vector_store %arg5[%c1_62, %c0_63, %c4_64, %c0_65], %73 {strides = array<i32>} : memref<2x16x8x32xf32, #tpu.memory_space<vmem>>, vector<1x16x1x32xf32>,
    %74 = vector.extract_strided_slice %7 {offsets = [0, 104], sizes = [16, 8], strides = [1, 1]} : vector<16x128xf32> to vector<16x8xf32>
    %cst_66 = arith.constant dense<0.000000e+00> : vector<16x32xf32>
    %75 = tpu.matmul %74, %8, %cst_66 {dimension_numbers = #tpu.dot_dimension_numbers<[1], [0], [0], [1], [0, 0, 1, 1], [], []>} : vector<16x8xf32>, vector<8x32xf32>, vector<16x32xf32> -> vector<16x32xf32>
    %c1_67 = arith.constant 1 : index
    %c0_68 = arith.constant 0 : index
    %c5_69 = arith.constant 5 : index
    %c0_70 = arith.constant 0 : index
    %76 = vector.load %arg5[%c1_67, %c0_68, %c5_69, %c0_70] : memref<2x16x8x32xf32, #tpu.memory_space<vmem>>, vector<1x16x1x32xf32>
    %77 = vector.shape_cast %76 : vector<1x16x1x32xf32> to vector<16x32xf32>
    %78 = vector.shape_cast %75 : vector<16x32xf32> to vector<1x16x1x32xf32>
    tpu.vector_store %arg5[%c1_67, %c0_68, %c5_69, %c0_70], %78 {strides = array<i32>} : memref<2x16x8x32xf32, #tpu.memory_space<vmem>>, vector<1x16x1x32xf32>,
    %79 = vector.extract_strided_slice %7 {offsets = [0, 112], sizes = [16, 8], strides = [1, 1]} : vector<16x128xf32> to vector<16x8xf32>
    %cst_71 = arith.constant dense<0.000000e+00> : vector<16x32xf32>
    %80 = tpu.matmul %79, %8, %cst_71 {dimension_numbers = #tpu.dot_dimension_numbers<[1], [0], [0], [1], [0, 0, 1, 1], [], []>} : vector<16x8xf32>, vector<8x32xf32>, vector<16x32xf32> -> vector<16x32xf32>
    %c1_72 = arith.constant 1 : index
    %c0_73 = arith.constant 0 : index
    %c6_74 = arith.constant 6 : index
    %c0_75 = arith.constant 0 : index
    %81 = vector.load %arg5[%c1_72, %c0_73, %c6_74, %c0_75] : memref<2x16x8x32xf32, #tpu.memory_space<vmem>>, vector<1x16x1x32xf32>
    %82 = vector.shape_cast %81 : vector<1x16x1x32xf32> to vector<16x32xf32>
    %83 = vector.shape_cast %80 : vector<16x32xf32> to vector<1x16x1x32xf32>
    tpu.vector_store %arg5[%c1_72, %c0_73, %c6_74, %c0_75], %83 {strides = array<i32>} : memref<2x16x8x32xf32, #tpu.memory_space<vmem>>, vector<1x16x1x32xf32>,
    %84 = vector.extract_strided_slice %7 {offsets = [0, 120], sizes = [16, 8], strides = [1, 1]} : vector<16x128xf32> to vector<16x8xf32>
    %cst_76 = arith.constant dense<0.000000e+00> : vector<16x32xf32>
    %85 = tpu.matmul %84, %8, %cst_76 {dimension_numbers = #tpu.dot_dimension_numbers<[1], [0], [0], [1], [0, 0, 1, 1], [], []>} : vector<16x8xf32>, vector<8x32xf32>, vector<16x32xf32> -> vector<16x32xf32>
    %c1_77 = arith.constant 1 : index
    %c0_78 = arith.constant 0 : index
    %c7_79 = arith.constant 7 : index
    %c0_80 = arith.constant 0 : index
    %86 = vector.load %arg5[%c1_77, %c0_78, %c7_79, %c0_80] : memref<2x16x8x32xf32, #tpu.memory_space<vmem>>, vector<1x16x1x32xf32>
    %87 = vector.shape_cast %86 : vector<1x16x1x32xf32> to vector<16x32xf32>
    %88 = vector.shape_cast %85 : vector<16x32xf32> to vector<1x16x1x32xf32>
    tpu.vector_store %arg5[%c1_77, %c0_78, %c7_79, %c0_80], %88 {strides = array<i32>} : memref<2x16x8x32xf32, #tpu.memory_space<vmem>>, vector<1x16x1x32xf32>,
    return
  }
  func.func @transform_0(%arg0: i32) -> (i32, i32) {
    %c0_i32 = arith.constant 0 : i32
    %c0_i32_0 = arith.constant 0 : i32
    return %arg0, %c0_i32 : i32, i32
  }
  func.func @transform_1(%arg0: i32) -> (i32, i32) {
    %c0_i32 = arith.constant 0 : i32
    %c0_i32_0 = arith.constant 0 : i32
    %c0_i32_1 = arith.constant 0 : i32
    return %c0_i32, %c0_i32_0 : i32, i32
  }
  func.func @transform_2(%arg0: i32) -> (i32, i32) {
    %c0_i32 = arith.constant 0 : i32
    %c0_i32_0 = arith.constant 0 : i32
    %c0_i32_1 = arith.constant 0 : i32
    return %c0_i32, %c0_i32_0 : i32, i32
  }
  func.func @transform_3(%arg0: i32) -> (i32, i32) {
    %c0_i32 = arith.constant 0 : i32
    %c0_i32_0 = arith.constant 0 : i32
    %c0_i32_1 = arith.constant 0 : i32
    return %c0_i32, %c0_i32_0 : i32, i32
  }
  func.func @transform_4(%arg0: i32) -> (i32, i32, i32, i32) {
    %c0_i32 = arith.constant 0 : i32
    %c0_i32_0 = arith.constant 0 : i32
    %c0_i32_1 = arith.constant 0 : i32
    %c0_i32_2 = arith.constant 0 : i32
    return %arg0, %c0_i32, %c0_i32_0, %c0_i32_1 : i32, i32, i32, i32
  }
}

</mosaic_0001>

<bundles_post_ra>
// kernel: fcu_up.1
= control target key start
LH: loop header
LB: loop body
LE: loop exit
PB: predicated region body
PF: predicated region fallthrough
CT: control target
= control target key end

     0   :  { %s4279_s15 = smov 0   ;;  %s5200_s0 = inlined_call_operand.vmem [shape: bf16[256,32], index: 0, kind: input, shape index: {}]   ;;  %s5201_s1 = inlined_call_operand.vmem [shape: bf16[16,32], index: 1, kind: input, shape index: {}]   ;;  %s5202_s2 = inlined_call_operand.vmem [shape: f32[16,1], index: 2, kind: input, shape index: {}]   ;;  %s5203_s3 = inlined_call_operand.vmem [shape: f32[8,32], index: 3, kind: input, shape index: {}]   ;;  %s5204_s4 = inlined_call_operand.vmem [shape: f32[4,16,8,32], index: 4, kind: output, shape index: {}]  }
   0x1 LB: > { %s3850_s16 = sadd.s32 4294967295, %s4233_s15   ;;  %p3854_p0 = scmp.ge.s32.totalorder %s4233_s15, 1  ;;  %s4233_s15 = sphi %s4279_s15, %s14_s15  }
   0x2   : > { %p163_p1 = scmp.lt.s32.totalorder %s4233_s15, 3 }
   0x4   : > { %p164_p2 = pnand %p3854_p0, %p163_p1 }
   0x5   : > { %s3855_s17 = sshll.u32 (!%p164_p2), %s3850_s16, 4  ;;  %s4238_s30 = smov (!%p164_p2), 112  }
   0x6   : > { %167 = sbr.rel (%p164_p2) target bundleno = 720 (0x2d0), region = 36  ;;  %p191_p3 = scmp.lt.s32.totalorder (!%p164_p2), %s3855_s17, 31 }
   0x7   : > { %s4239_s5 = smov (!%p164_p2), 120   ;;  %s4240_s6 = smov (!%p164_p2), 104  }
   0x8   : > { %s4241_s7 = smov (!%p164_p2), 96   ;;  %s4242_s8 = smov (!%p164_p2), 88  }
   0x9   : > { %s4243_s9 = smov (!%p164_p2), 80   ;;  %s4244_s10 = smov (!%p164_p2), 72  }
   0xa   : > { %s4245_s11 = smov (!%p164_p2), 64   ;;  %s4246_s12 = smov (!%p164_p2), 56  }
   0xb   : > { %v4235_v0 = vmov 0.0   ;;  %vm4236_vm0 = vmmov 0   ;;  %v222_v1 = vld [vmem:[%s5202_s2] sm:$0xff]  ;;  %v4237_v2 = vmov 0   ;;  %s5206_s17 = smov (!%p191_p3, %s3855_s17), 31  ;;  %v223_v3 = vld [vmem:[%s5202_s2 + $0x8] sm:$0xff] }
   0xc   : > { %4090 = vmatprep.subr.bf16.mxu0 %v4235_v0  ;;  %4106 = vmatprep.mubr.msk.bf16.mxu0 %vm4236_vm0, %v4235_v0  ;;  %s3856_s22 = sshll.u32 %s5206_s17, 2  ;;  %vm279_vm1 = vcmask 261120   ;;  %v4226_v20 = vld [vmem:[%s5201_s1] sm:$0xff]   ;;  %vm351_vm2 = vcmask 64512   ;;  %s4247_s13 = smov 48   ;;  %vm549_vm3 = vcmask 253952  }
   0xd   : > { %4217 = vset.pattern.permute.xlu0 %v4237_v2  ;;  %s4298_s25 = scalar_lea.vmem %s5200_s0, %s3856_s22  ;;  %v4323_v21 = vld [vmem:[%s5203_s3] sm:$0xff]  ;;  %s4248_s14 = smov 40   ;;  %v4253_v62 = vmov 1966171168  }
   0xe   : > { %226 = vperm.xlu0 %4217, %v222_v1   ;;  %v4218_v4 = vld [vmem:[%s4298_s25 + $0x38] sm:$0xff]   ;;  %v4219_v6 = vld [vmem:[%s4298_s25 + $0x30] sm:$0xff]   ;;  %v4220_v8 = vld [vmem:[%s4298_s25 + $0x28] sm:$0xff]   ;;  %4110 = vmatprep.subr.mxu1 %v4323_v21  ;;  %s4249_s17 = smov 32   ;;  %s4250_s18 = smov 24   ;;  %v437_v63 = vunpack.c.l.s4 %v4253_v62 }
   0xf   : > { %v305_v5 = vsel %vm279_vm1, %v4218_v4, 0  ;;  %v302_v7 = vsel %vm279_vm1, %v4219_v6, 0  ;;  %v299_v9 = vsel %vm279_vm1, %v4220_v8, 0  ;;  %v4221_v10 = vld [vmem:[%s4298_s25 + $0x20] sm:$0xff]   ;;  %v4222_v12 = vld [vmem:[%s4298_s25 + $0x18] sm:$0xff]   ;;  %v4223_v14 = vld [vmem:[%s4298_s25 + $0x10] sm:$0xff]   ;;  %4111 = vmatpush3.msra.mxu1 %v4323_v21 }
  0x10   : > { %4091 = vmatpush3.bf16.xpose.msra.mxu0 %v305_v5  ;;  %v296_v11 = vsel %vm279_vm1, %v4221_v10, 0  ;;  %v293_v13 = vsel %vm279_vm1, %v4222_v12, 0  ;;  %v290_v15 = vsel %vm279_vm1, %v4223_v14, 0  ;;  %v4224_v16 = vld [vmem:[%s4298_s25 + $0x8] sm:$0xff]   ;;  %v4225_v18 = vld [vmem:[%s4298_s25] sm:$0xff]   ;;  %4115 = vmatprep.subr.mxu1 %v4323_v21  ;;  %s4251_s19 = smov 16   ;;  %v438_v1 = vunpack.c.0.s8 %v437_v63 }
  0x11   : > { %4092 = vmatprep.subr.bf16.mxu0 %v4235_v0  ;;  %v287_v17 = vsel %vm279_vm1, %v4224_v16, 0  ;;  %v284_v19 = vsel %vm279_vm1, %v4225_v18, 0  ;;  %s4252_s20 = smov 8   ;;  %s3857_s21 = sshll.u32 %s3850_s16, 1 }
  0x12   : > { %231 = vperm.xlu0 %4217, %v223_v3   ;;  %p197_p4 = scmp.lt.s32.totalorder %s3857_s21, 3 }
  0x14   : > { %s5208_s21 = smov (!%p197_p4, %s3857_s21), 3 }
  0x15   : > { %s4032_s22 = sshll.u32 %s5208_s21, 7 }
  0x16   : > { %s4397_s25 = scalar_lea.vmem %s5204_s4, %s4032_s22 }
  0x18   : > { %4093 = vmatpush3.bf16.xpose.msra.mxu0 %v302_v7 }
  0x19   : > { %4094 = vmatprep.subr.bf16.mxu0 %v4235_v0 }
  0x20   : > { %4095 = vmatpush3.bf16.xpose.msra.mxu0 %v299_v9 }
  0x21   : > { %4096 = vmatprep.subr.bf16.mxu0 %v4235_v0 }
  0x28   : > { %4097 = vmatpush3.bf16.xpose.msra.mxu0 %v296_v11 }
  0x29   : > { %4098 = vmatprep.subr.bf16.mxu0 %v4235_v0 }
  0x30   : > { %4099 = vmatpush3.bf16.xpose.msra.mxu0 %v293_v13 }
  0x31   : > { %4100 = vmatprep.subr.bf16.mxu0 %v4235_v0 }
  0x38   : > { %4101 = vmatpush3.bf16.xpose.msra.mxu0 %v290_v15 }
  0x39   : > { %4102 = vmatprep.subr.bf16.mxu0 %v4235_v0 }
  0x40   : > { %4103 = vmatpush3.bf16.xpose.msra.mxu0 %v287_v17 }
  0x41   : > { %4104 = vmatprep.subr.bf16.mxu0 %v4235_v0  ;;  %v439_v0 = vlaneseq }
  0x43   : > { %v440_v2 = vshrl.u32 %v439_v0, 7 }
  0x45   : > { %v4391_v3 = vsub.s32 %v438_v1, %v440_v2 }
  0x48   : > { %4105 = vmatpush3.bf16.xpose.msra.mxu0 %v284_v19 }
  0x4f   : > { %4107 = vmatmul.mubr.msk.bf16.vlgmr.msra.gmra.mxu0 %vm279_vm1, %v4226_v20 }
  0x89   : > { %v227_v22 = vpop.permute.xlu0 %226 }
  0x8d   : > { %v232_v27 = vpop.permute.xlu0 %231 }
 0x10f   : > { %v341_v23 = vpop.f32.mrf.mxu0 }
 0x110   : > { %v342_v24 = vadd.f32 %v341_v23, %v227_v22 }
 0x111   : > { %v4108_v25 = vpop.f32.mrf.mxu0 }
 0x112   : > { %v348_v26 = vmax.f32 %v342_v24, 0.0 }
 0x113   : > { %v344_v28 = vpop.f32.mrf.mxu0 }
 0x114   : > { %v345_v29 = vadd.f32 %v344_v28, %v232_v27  ;;  %781 = vrot.lane.b32.xlu0 %v348_v26, %s4238_s30  ;;  %566 = vrot.lane.b32.xlu1 %v348_v26, %s4239_s5 }
 0x115   : > { %4112 = vmatprep.mubr.msk.f32.mxu1 %vm351_vm2, %v348_v26  ;;  %v4109_v30 = vpop.f32.mrf.mxu0 }
 0x116   : > { %v349_v31 = vmax.f32 %v345_v29, 0.0 }
 0x118   : > { %996 = vrot.lane.b32.xlu0 %v348_v26, %s4240_s6  ;;  %568 = vrot.lane.b32.xlu1 %v349_v31, %s4239_s5 }
 0x119   : > { %4113 = vmatmul.mubr.msk.f32.vlgmr.msra.gmra.mxu1 %vm351_vm2, %v349_v31 }
 0x11a   : > { %4116 = vmatpush3.msra.mxu1 %v4323_v21 }
 0x11b   : > { %4120 = vmatprep.subr.mxu1 %v4323_v21 }
 0x11c   : > { %1211 = vrot.lane.b32.xlu0 %v348_v26, %s4241_s7  ;;  %783 = vrot.lane.b32.xlu1 %v349_v31, %s4238_s30 }
 0x120   : > { %1426 = vrot.lane.b32.xlu0 %v348_v26, %s4242_s8  ;;  %998 = vrot.lane.b32.xlu1 %v349_v31, %s4240_s6 }
 0x124   : > { %1641 = vrot.lane.b32.xlu0 %v348_v26, %s4243_s9  ;;  %1213 = vrot.lane.b32.xlu1 %v349_v31, %s4241_s7 }
 0x128   : > { %1856 = vrot.lane.b32.xlu0 %v348_v26, %s4244_s10  ;;  %1428 = vrot.lane.b32.xlu1 %v349_v31, %s4242_s8 }
 0x12c   : > { %2071 = vrot.lane.b32.xlu0 %v348_v26, %s4245_s11  ;;  %1643 = vrot.lane.b32.xlu1 %v349_v31, %s4243_s9 }
 0x130   : > { %2287 = vrot.lane.b32.xlu0 %v348_v26, %s4246_s12  ;;  %1858 = vrot.lane.b32.xlu1 %v349_v31, %s4244_s10 }
 0x134   : > { %2502 = vrot.lane.b32.xlu0 %v348_v26, %s4247_s13  ;;  %2073 = vrot.lane.b32.xlu1 %v349_v31, %s4245_s11 }
 0x138   : > { %2717 = vrot.lane.b32.xlu0 %v348_v26, %s4248_s14  ;;  %2289 = vrot.lane.b32.xlu1 %v349_v31, %s4246_s12 }
 0x13c   : > { %2932 = vrot.lane.b32.xlu0 %v348_v26, %s4249_s17  ;;  %2504 = vrot.lane.b32.xlu1 %v349_v31, %s4247_s13 }
 0x140   : > { %3147 = vrot.lane.b32.xlu0 %v348_v26, %s4250_s18  ;;  %2719 = vrot.lane.b32.xlu1 %v349_v31, %s4248_s14 }
 0x144   : > { %3362 = vrot.lane.b32.xlu0 %v348_v26, %s4251_s19  ;;  %2934 = vrot.lane.b32.xlu1 %v349_v31, %s4249_s17 }
 0x148   : > { %3577 = vrot.lane.b32.xlu0 %v348_v26, %s4252_s20  ;;  %3149 = vrot.lane.b32.xlu1 %v349_v31, %s4250_s18 }
 0x14c   : > { %3364 = vrot.lane.b32.xlu1 %v349_v31, %s4251_s19 }
 0x150   : > { %3579 = vrot.lane.b32.xlu1 %v349_v31, %s4252_s20 }
 0x186   : > { %v782_v32 = vpop.permute.xlu0 %781  ;;  %v567_v33 = vpop.permute.xlu1 %566 }
 0x187   : > { %4117 = vmatprep.mubr.msk.f32.mxu1 %vm351_vm2, %v567_v33 }
 0x18a   : > { %v997_v34 = vpop.permute.xlu0 %996  ;;  %v569_v35 = vpop.permute.xlu1 %568 }
 0x18b   : > { %4118 = vmatmul.mubr.msk.f32.vlgmr.msra.gmra.mxu1 %vm351_vm2, %v569_v35 }
 0x18c   : > { %4121 = vmatpush3.msra.mxu1 %v4323_v21  ;;  %4122 = vmatprep.mubr.msk.f32.mxu1 %vm351_vm2, %v782_v32 }
 0x18d   : > { %4125 = vmatprep.subr.mxu1 %v4323_v21 }
 0x18e   : > { %v1212_v36 = vpop.permute.xlu0 %1211  ;;  %v784_v37 = vpop.permute.xlu1 %783 }
 0x18f   : > { %4123 = vmatmul.mubr.msk.f32.vlgmr.msra.gmra.mxu1 %vm351_vm2, %v784_v37 }
 0x190   : > { %4126 = vmatpush3.msra.mxu1 %v4323_v21  ;;  %4127 = vmatprep.mubr.msk.f32.mxu1 %vm351_vm2, %v997_v34 }
 0x191   : > { %4130 = vmatprep.subr.mxu1 %v4323_v21 }
 0x192   : > { %v1427_v38 = vpop.permute.xlu0 %1426  ;;  %v999_v39 = vpop.permute.xlu1 %998 }
 0x193   : > { %4128 = vmatmul.mubr.msk.f32.vlgmr.msra.gmra.mxu1 %vm351_vm2, %v999_v39 }
 0x194   : > { %4131 = vmatpush3.msra.mxu1 %v4323_v21  ;;  %4132 = vmatprep.mubr.msk.f32.mxu1 %vm351_vm2, %v1212_v36 }
 0x195   : > { %4135 = vmatprep.subr.mxu1 %v4323_v21 }
 0x196   : > { %v1642_v40 = vpop.permute.xlu0 %1641  ;;  %v1214_v41 = vpop.permute.xlu1 %1213 }
 0x197   : > { %4133 = vmatmul.mubr.msk.f32.vlgmr.msra.gmra.mxu1 %vm351_vm2, %v1214_v41 }
 0x198   : > { %4136 = vmatpush3.msra.mxu1 %v4323_v21  ;;  %4137 = vmatprep.mubr.msk.f32.mxu1 %vm351_vm2, %v1427_v38 }
 0x199   : > { %4140 = vmatprep.subr.mxu1 %v4323_v21 }
 0x19a   : > { %v1857_v42 = vpop.permute.xlu0 %1856  ;;  %v1429_v43 = vpop.permute.xlu1 %1428 }
 0x19b   : > { %4138 = vmatmul.mubr.msk.f32.vlgmr.msra.gmra.mxu1 %vm351_vm2, %v1429_v43 }
 0x19c   : > { %4141 = vmatpush3.msra.mxu1 %v4323_v21  ;;  %4142 = vmatprep.mubr.msk.f32.mxu1 %vm351_vm2, %v1642_v40 }
 0x19d   : > { %4145 = vmatprep.subr.mxu1 %v4323_v21 }
 0x19e   : > { %v2072_v44 = vpop.permute.xlu0 %2071  ;;  %v1644_v45 = vpop.permute.xlu1 %1643 }
 0x19f   : > { %4143 = vmatmul.mubr.msk.f32.vlgmr.msra.gmra.mxu1 %vm351_vm2, %v1644_v45 }
 0x1a0   : > { %4146 = vmatpush3.msra.mxu1 %v4323_v21  ;;  %4147 = vmatprep.mubr.msk.f32.mxu1 %vm351_vm2, %v1857_v42 }
 0x1a1   : > { %4150 = vmatprep.subr.mxu1 %v4323_v21 }
 0x1a2   : > { %v2288_v46 = vpop.permute.xlu0 %2287  ;;  %v1859_v47 = vpop.permute.xlu1 %1858 }
 0x1a3   : > { %4148 = vmatmul.mubr.msk.f32.vlgmr.msra.gmra.mxu1 %vm351_vm2, %v1859_v47 }
 0x1a4   : > { %4151 = vmatpush3.msra.mxu1 %v4323_v21  ;;  %4152 = vmatprep.mubr.msk.f32.mxu1 %vm351_vm2, %v2072_v44 }
 0x1a5   : > { %4155 = vmatprep.subr.mxu1 %v4323_v21 }
 0x1a6   : > { %v2503_v48 = vpop.permute.xlu0 %2502  ;;  %v2074_v49 = vpop.permute.xlu1 %2073 }
 0x1a7   : > { %4153 = vmatmul.mubr.msk.f32.vlgmr.msra.gmra.mxu1 %vm351_vm2, %v2074_v49 }
 0x1a8   : > { %4156 = vmatpush3.msra.mxu1 %v4323_v21  ;;  %4157 = vmatprep.mubr.msk.f32.mxu1 %vm351_vm2, %v2288_v46 }
 0x1a9   : > { %4160 = vmatprep.subr.mxu1 %v4323_v21 }
 0x1aa   : > { %v2718_v50 = vpop.permute.xlu0 %2717  ;;  %v2290_v51 = vpop.permute.xlu1 %2289 }
 0x1ab   : > { %4158 = vmatmul.mubr.msk.f32.vlgmr.msra.gmra.mxu1 %vm351_vm2, %v2290_v51 }
 0x1ac   : > { %4161 = vmatpush3.msra.mxu1 %v4323_v21  ;;  %4162 = vmatprep.mubr.msk.f32.mxu1 %vm351_vm2, %v2503_v48 }
 0x1ad   : > { %4165 = vmatprep.subr.mxu1 %v4323_v21 }
 0x1ae   : > { %v2933_v52 = vpop.permute.xlu0 %2932  ;;  %v2505_v53 = vpop.permute.xlu1 %2504 }
 0x1af   : > { %4163 = vmatmul.mubr.msk.f32.vlgmr.msra.gmra.mxu1 %vm351_vm2, %v2505_v53 }
 0x1b0   : > { %4166 = vmatpush3.msra.mxu1 %v4323_v21  ;;  %4167 = vmatprep.mubr.msk.f32.mxu1 %vm351_vm2, %v2718_v50 }
 0x1b1   : > { %4170 = vmatprep.subr.mxu1 %v4323_v21 }
 0x1b2   : > { %v2720_v54 = vpop.permute.xlu1 %2719  ;;  %v3148_v55 = vpop.permute.xlu0 %3147 }
 0x1b3   : > { %4168 = vmatmul.mubr.msk.f32.vlgmr.msra.gmra.mxu1 %vm351_vm2, %v2720_v54 }
 0x1b4   : > { %4171 = vmatpush3.msra.mxu1 %v4323_v21  ;;  %4172 = vmatprep.mubr.msk.f32.mxu1 %vm351_vm2, %v2933_v52 }
 0x1b5   : > { %4175 = vmatprep.subr.mxu1 %v4323_v21 }
 0x1b6   : > { %v2935_v56 = vpop.permute.xlu1 %2934  ;;  %v3363_v57 = vpop.permute.xlu0 %3362 }
 0x1b7   : > { %4173 = vmatmul.mubr.msk.f32.vlgmr.msra.gmra.mxu1 %vm351_vm2, %v2935_v56 }
 0x1b8   : > { %4176 = vmatpush3.msra.mxu1 %v4323_v21  ;;  %4177 = vmatprep.mubr.msk.f32.mxu1 %vm351_vm2, %v3148_v55 }
 0x1b9   : > { %4180 = vmatprep.subr.mxu1 %v4323_v21 }
 0x1ba   : > { %v3150_v58 = vpop.permute.xlu1 %3149  ;;  %v3578_v60 = vpop.permute.xlu0 %3577 }
 0x1bb   : > { %4178 = vmatmul.mubr.msk.f32.vlgmr.msra.gmra.mxu1 %vm351_vm2, %v3150_v58 }
 0x1bc   : > { %4181 = vmatpush3.msra.mxu1 %v4323_v21  ;;  %4182 = vmatprep.mubr.msk.f32.mxu1 %vm351_vm2, %v3363_v57 }
 0x1bd   : > { %4185 = vmatprep.subr.mxu1 %v4323_v21 }
 0x1be   : > { %v3365_v59 = vpop.permute.xlu1 %3364 }
 0x1bf   : > { %4183 = vmatmul.mubr.msk.f32.vlgmr.msra.gmra.mxu1 %vm351_vm2, %v3365_v59 }
 0x1c0   : > { %4186 = vmatpush3.msra.mxu1 %v4323_v21  ;;  %4187 = vmatprep.mubr.msk.f32.mxu1 %vm351_vm2, %v3578_v60 }
 0x1c2   : > { %v3580_v61 = vpop.permute.xlu1 %3579 }
 0x1c3   : > { %4188 = vmatmul.mubr.msk.f32.vlgmr.msra.gmra.mxu1 %vm351_vm2, %v3580_v61 }
 0x1d9   : > { %v4114_v4 = vpop.f32.mrf.mxu1 }
 0x1da   : > { %v484_v5 = vcombine.high %v4114_v4, %v4114_v4  ;;  %v491_v6 = vrot.slane %v4114_v4, %v4391_v3 }
 0x1db   : > { %v424_v7 = vpop.f32.mrf.mxu1 }
 0x1dc   : > { %v498_v8 = vrot.slane %v484_v5, %v4391_v3  ;;  %v499_v9 = vcombine.high %v491_v6, %v491_v6  ;;  %v507_v10 = vrot.slane %v491_v6, %v4391_v3  ;;  %v435_v11 = vcombine.high %v424_v7, %v424_v7 }
 0x1dd   : > { %v442_v12 = vrot.slane %v424_v7, %v4391_v3 }
 0x1de   : > { %v500_v13 = vcombine.high %v498_v8, %v498_v8  ;;  %v514_v14 = vrot.slane %v498_v8, %v4391_v3  ;;  %v521_v15 = vrot.slane %v499_v9, %v4391_v3  ;;  %v529_v16 = vcombine.high %v507_v10, %v507_v10  ;;  %558 = vst.msk [vmem:[%s4397_s25 + $0x40] sm:$0x1] %vm549_vm3, %v507_v10 }
 0x1df   : > { %v449_v17 = vrot.slane %v435_v11, %v4391_v3  ;;  %v450_v18 = vcombine.high %v442_v12, %v442_v12  ;;  %v458_v19 = vrot.slane %v442_v12, %v4391_v3 }
 0x1e0   : > { %v528_v20 = vrot.slane %v500_v13, %v4391_v3  ;;  %v530_v21 = vcombine.high %v514_v14, %v514_v14  ;;  %v531_v22 = vcombine.high %v521_v15, %v521_v15  ;;  %559 = vst.msk [vmem:[%s4397_s25 + $0x48] sm:$0x1] %vm549_vm3, %v521_v15  ;;  %560 = vst.msk [vmem:[%s4397_s25 + $0x50] sm:$0x1] %vm549_vm3, %v529_v16 }
 0x1e1   : > { %562 = vst.msk [vmem:[%s4397_s25 + $0x60] sm:$0x1] %vm549_vm3, %v514_v14  ;;  %v451_v23 = vcombine.high %v449_v17, %v449_v17  ;;  %v465_v24 = vrot.slane %v449_v17, %v4391_v3  ;;  %v472_v25 = vrot.slane %v450_v18, %v4391_v3  ;;  %v480_v26 = vcombine.high %v458_v19, %v458_v19 }
 0x1e2   : > { %550 = vst.msk [vmem:[%s4397_s25] sm:$0x1] %vm549_vm3, %v458_v19  ;;  %v532_v27 = vcombine.high %v528_v20, %v528_v20  ;;  %561 = vst.msk [vmem:[%s4397_s25 + $0x58] sm:$0x1] %vm549_vm3, %v531_v22 }
 0x1e3   : > { %563 = vst.msk [vmem:[%s4397_s25 + $0x68] sm:$0x1] %vm549_vm3, %v528_v20  ;;  %564 = vst.msk [vmem:[%s4397_s25 + $0x70] sm:$0x1] %vm549_vm3, %v530_v21  ;;  %v479_v28 = vrot.slane %v451_v23, %v4391_v3  ;;  %v481_v29 = vcombine.high %v465_v24, %v465_v24  ;;  %v482_v30 = vcombine.high %v472_v25, %v472_v25 }
 0x1e4   : > { %551 = vst.msk [vmem:[%s4397_s25 + $0x8] sm:$0x1] %vm549_vm3, %v472_v25  ;;  %552 = vst.msk [vmem:[%s4397_s25 + $0x10] sm:$0x1] %vm549_vm3, %v480_v26 }
 0x1e5   : > { %554 = vst.msk [vmem:[%s4397_s25 + $0x20] sm:$0x1] %vm549_vm3, %v465_v24  ;;  %565 = vst.msk [vmem:[%s4397_s25 + $0x78] sm:$0x1] %vm549_vm3, %v532_v27  ;;  %v483_v31 = vcombine.high %v479_v28, %v479_v28 }
 0x1e6   : > { %553 = vst.msk [vmem:[%s4397_s25 + $0x18] sm:$0x1] %vm549_vm3, %v482_v30  ;;  %555 = vst.msk [vmem:[%s4397_s25 + $0x28] sm:$0x1] %vm549_vm3, %v479_v28 }
 0x1e7   : > { %556 = vst.msk [vmem:[%s4397_s25 + $0x30] sm:$0x1] %vm549_vm3, %v481_v29  ;;  %557 = vst.msk [vmem:[%s4397_s25 + $0x38] sm:$0x1] %vm549_vm3, %v483_v31 }
 0x24b   : > { %v4119_v32 = vpop.f32.mrf.mxu1 }
 0x24c   : > { %v700_v33 = vcombine.high %v4119_v32, %v4119_v32  ;;  %v707_v34 = vrot.slane %v4119_v32, %v4391_v3 }
 0x24d   : > { %v640_v35 = vpop.f32.mrf.mxu1 }
 0x24e   : > { %v714_v36 = vrot.slane %v700_v33, %v4391_v3  ;;  %v715_v37 = vcombine.high %v707_v34, %v707_v34  ;;  %v723_v38 = vrot.slane %v707_v34, %v4391_v3  ;;  %v651_v39 = vcombine.high %v640_v35, %v640_v35 }
 0x24f   : > { %v658_v40 = vrot.slane %v640_v35, %v4391_v3  ;;  %v4124_v41 = vpop.f32.mrf.mxu1 }
 0x250   : > { %v716_v42 = vcombine.high %v714_v36, %v714_v36  ;;  %v730_v43 = vrot.slane %v714_v36, %v4391_v3  ;;  %v737_v44 = vrot.slane %v715_v37, %v4391_v3  ;;  %v745_v45 = vcombine.high %v723_v38, %v723_v38  ;;  %773 = vst.msk [vmem:[%s4397_s25 + $0x41] sm:$0x1] %vm549_vm3, %v723_v38 }
 0x251   : > { %v665_v46 = vrot.slane %v651_v39, %v4391_v3  ;;  %v666_v47 = vcombine.high %v658_v40, %v658_v40  ;;  %v674_v48 = vrot.slane %v658_v40, %v4391_v3  ;;  %v915_v49 = vcombine.high %v4124_v41, %v4124_v41  ;;  %v855_v50 = vpop.f32.mrf.mxu1 }
 0x252   : > { %v744_v51 = vrot.slane %v716_v42, %v4391_v3  ;;  %v746_v52 = vcombine.high %v730_v43, %v730_v43  ;;  %v747_v53 = vcombine.high %v737_v44, %v737_v44  ;;  %774 = vst.msk [vmem:[%s4397_s25 + $0x49] sm:$0x1] %vm549_vm3, %v737_v44  ;;  %775 = vst.msk [vmem:[%s4397_s25 + $0x51] sm:$0x1] %vm549_vm3, %v745_v45 }
 0x253   : > { %777 = vst.msk [vmem:[%s4397_s25 + $0x61] sm:$0x1] %vm549_vm3, %v730_v43  ;;  %v922_v54 = vrot.slane %v4124_v41, %v4391_v3  ;;  %v667_v55 = vcombine.high %v665_v46, %v665_v46  ;;  %v681_v56 = vrot.slane %v665_v46, %v4391_v3  ;;  %v688_v57 = vrot.slane %v666_v47, %v4391_v3  ;;  %v4129_v59 = vpop.f32.mrf.mxu1 }
 0x254   : > { %v696_v58 = vcombine.high %v674_v48, %v674_v48  ;;  %765 = vst.msk [vmem:[%s4397_s25 + $0x1] sm:$0x1] %vm549_vm3, %v674_v48  ;;  %v748_v60 = vcombine.high %v744_v51, %v744_v51  ;;  %776 = vst.msk [vmem:[%s4397_s25 + $0x59] sm:$0x1] %vm549_vm3, %v747_v53  ;;  %v929_v61 = vrot.slane %v915_v49, %v4391_v3 }
 0x255   : > { %778 = vst.msk [vmem:[%s4397_s25 + $0x69] sm:$0x1] %vm549_vm3, %v744_v51  ;;  %779 = vst.msk [vmem:[%s4397_s25 + $0x71] sm:$0x1] %vm549_vm3, %v746_v52  ;;  %v930_v62 = vcombine.high %v922_v54, %v922_v54  ;;  %v938_v63 = vrot.slane %v922_v54, %v4391_v3  ;;  %v695_v0 = vrot.slane %v667_v55, %v4391_v3  ;;  %v4479_v5 = vpop.f32.mrf.mxu1 }
 0x256   : > { %v697_v1 = vcombine.high %v681_v56, %v681_v56  ;;  %v698_v2 = vcombine.high %v688_v57, %v688_v57  ;;  %766 = vst.msk [vmem:[%s4397_s25 + $0x9] sm:$0x1] %vm549_vm3, %v688_v57  ;;  %767 = vst.msk [vmem:[%s4397_s25 + $0x11] sm:$0x1] %vm549_vm3, %v696_v58  ;;  %v866_v4 = vcombine.high %v855_v50, %v855_v50 }
 0x257   : > { %769 = vst.msk [vmem:[%s4397_s25 + $0x21] sm:$0x1] %vm549_vm3, %v681_v56  ;;  %780 = vst.msk [vmem:[%s4397_s25 + $0x79] sm:$0x1] %vm549_vm3, %v748_v60  ;;  %v931_v6 = vcombine.high %v929_v61, %v929_v61  ;;  %v945_v7 = vrot.slane %v929_v61, %v4391_v3  ;;  %v952_v8 = vrot.slane %v930_v62, %v4391_v3  ;;  %v4134_v14 = vpop.f32.mrf.mxu1 }
 0x258   : > { %v960_v9 = vcombine.high %v938_v63, %v938_v63  ;;  %988 = vst.msk [vmem:[%s4397_s25 + $0x42] sm:$0x1] %vm549_vm3, %v938_v63  ;;  %v699_v10 = vcombine.high %v695_v0, %v695_v0  ;;  %768 = vst.msk [vmem:[%s4397_s25 + $0x19] sm:$0x1] %vm549_vm3, %v698_v2  ;;  %v873_v11 = vrot.slane %v855_v50, %v4391_v3 }
 0x259   : > { %770 = vst.msk [vmem:[%s4397_s25 + $0x29] sm:$0x1] %vm549_vm3, %v695_v0  ;;  %771 = vst.msk [vmem:[%s4397_s25 + $0x31] sm:$0x1] %vm549_vm3, %v697_v1  ;;  %v880_v12 = vrot.slane %v866_v4, %v4391_v3  ;;  %v1130_v13 = vcombine.high %v4129_v59, %v4129_v59  ;;  %v959_v15 = vrot.slane %v931_v6, %v4391_v3  ;;  %v4507_v23 = vpop.f32.mrf.mxu1 }
 0x25a   : > { %v961_v16 = vcombine.high %v945_v7, %v945_v7  ;;  %v962_v17 = vcombine.high %v952_v8, %v952_v8  ;;  %989 = vst.msk [vmem:[%s4397_s25 + $0x4a] sm:$0x1] %vm549_vm3, %v952_v8  ;;  %990 = vst.msk [vmem:[%s4397_s25 + $0x52] sm:$0x1] %vm549_vm3, %v960_v9  ;;  %v1137_v18 = vrot.slane %v4129_v59, %v4391_v3 }
 0x25b   : > { %992 = vst.msk [vmem:[%s4397_s25 + $0x62] sm:$0x1] %vm549_vm3, %v945_v7  ;;  %772 = vst.msk [vmem:[%s4397_s25 + $0x39] sm:$0x1] %vm549_vm3, %v699_v10  ;;  %v881_v19 = vcombine.high %v873_v11, %v873_v11  ;;  %v882_v20 = vcombine.high %v880_v12, %v880_v12  ;;  %v889_v21 = vrot.slane %v873_v11, %v4391_v3  ;;  %v4523_v32 = vpop.f32.mrf.mxu1 }
 0x25c   : > { %v896_v22 = vrot.slane %v880_v12, %v4391_v3  ;;  %v963_v24 = vcombine.high %v959_v15, %v959_v15  ;;  %991 = vst.msk [vmem:[%s4397_s25 + $0x5a] sm:$0x1] %vm549_vm3, %v962_v17  ;;  %993 = vst.msk [vmem:[%s4397_s25 + $0x6a] sm:$0x1] %vm549_vm3, %v959_v15  ;;  %v1144_v25 = vrot.slane %v1130_v13, %v4391_v3 }
 0x25d   : > { %994 = vst.msk [vmem:[%s4397_s25 + $0x72] sm:$0x1] %vm549_vm3, %v961_v16  ;;  %v1145_v26 = vcombine.high %v1137_v18, %v1137_v18  ;;  %v1153_v27 = vrot.slane %v1137_v18, %v4391_v3  ;;  %v903_v28 = vrot.slane %v881_v19, %v4391_v3  ;;  %v910_v29 = vrot.slane %v882_v20, %v4391_v3  ;;  %v4543_v41 = vpop.f32.mrf.mxu1 }
 0x25e   : > { %v911_v30 = vcombine.high %v889_v21, %v889_v21  ;;  %v912_v31 = vcombine.high %v896_v22, %v896_v22  ;;  %980 = vst.msk [vmem:[%s4397_s25 + $0x2] sm:$0x1] %vm549_vm3, %v889_v21  ;;  %984 = vst.msk [vmem:[%s4397_s25 + $0x22] sm:$0x1] %vm549_vm3, %v896_v22  ;;  %v1146_v33 = vcombine.high %v1144_v25, %v1144_v25 }
 0x25f   : > { %995 = vst.msk [vmem:[%s4397_s25 + $0x7a] sm:$0x1] %vm549_vm3, %v963_v24  ;;  %v1160_v34 = vrot.slane %v1144_v25, %v4391_v3  ;;  %v1167_v35 = vrot.slane %v1145_v26, %v4391_v3  ;;  %v1175_v36 = vcombine.high %v1153_v27, %v1153_v27  ;;  %1203 = vst.msk [vmem:[%s4397_s25 + $0x43] sm:$0x1] %vm549_vm3, %v1153_v27  ;;  %v4559_v50 = vpop.f32.mrf.mxu1 }
 0x260   : > { %v913_v37 = vcombine.high %v903_v28, %v903_v28  ;;  %v914_v38 = vcombine.high %v910_v29, %v910_v29  ;;  %981 = vst.msk [vmem:[%s4397_s25 + $0xa] sm:$0x1] %vm549_vm3, %v903_v28  ;;  %982 = vst.msk [vmem:[%s4397_s25 + $0x12] sm:$0x1] %vm549_vm3, %v911_v30  ;;  %v1081_v39 = vcombine.high %v4479_v5, %v4479_v5 }
 0x261   : > { %985 = vst.msk [vmem:[%s4397_s25 + $0x2a] sm:$0x1] %vm549_vm3, %v910_v29  ;;  %986 = vst.msk [vmem:[%s4397_s25 + $0x32] sm:$0x1] %vm549_vm3, %v912_v31  ;;  %v1088_v40 = vrot.slane %v4479_v5, %v4391_v3  ;;  %v1174_v42 = vrot.slane %v1146_v33, %v4391_v3  ;;  %v1176_v43 = vcombine.high %v1160_v34, %v1160_v34  ;;  %v4576_v59 = vpop.f32.mrf.mxu1 }
 0x262   : > { %v1177_v44 = vcombine.high %v1167_v35, %v1167_v35  ;;  %1204 = vst.msk [vmem:[%s4397_s25 + $0x4b] sm:$0x1] %vm549_vm3, %v1167_v35  ;;  %1205 = vst.msk [vmem:[%s4397_s25 + $0x53] sm:$0x1] %vm549_vm3, %v1175_v36  ;;  %v1345_v45 = vcombine.high %v4134_v14, %v4134_v14  ;;  %v1095_v46 = vrot.slane %v1081_v39, %v4391_v3 }
 0x263   : > { %1207 = vst.msk [vmem:[%s4397_s25 + $0x63] sm:$0x1] %vm549_vm3, %v1160_v34  ;;  %983 = vst.msk [vmem:[%s4397_s25 + $0x1a] sm:$0x1] %vm549_vm3, %v913_v37  ;;  %v1096_v47 = vcombine.high %v1088_v40, %v1088_v40  ;;  %v1104_v48 = vrot.slane %v1088_v40, %v4391_v3  ;;  %v1352_v49 = vrot.slane %v4134_v14, %v4391_v3  ;;  %v4590_v5 = vpop.f32.mrf.mxu1 }
 0x264   : > { %987 = vst.msk [vmem:[%s4397_s25 + $0x3a] sm:$0x1] %vm549_vm3, %v914_v38  ;;  %v1178_v51 = vcombine.high %v1174_v42, %v1174_v42  ;;  %1206 = vst.msk [vmem:[%s4397_s25 + $0x5b] sm:$0x1] %vm549_vm3, %v1177_v44  ;;  %v1359_v52 = vrot.slane %v1345_v45, %v4391_v3  ;;  %v1296_v53 = vcombine.high %v4507_v23, %v4507_v23 }
 0x265   : > { %1208 = vst.msk [vmem:[%s4397_s25 + $0x6b] sm:$0x1] %vm549_vm3, %v1174_v42  ;;  %1209 = vst.msk [vmem:[%s4397_s25 + $0x73] sm:$0x1] %vm549_vm3, %v1176_v43  ;;  %v1303_v54 = vrot.slane %v4507_v23, %v4391_v3  ;;  %v1097_v55 = vcombine.high %v1095_v46, %v1095_v46  ;;  %v1111_v56 = vrot.slane %v1095_v46, %v4391_v3  ;;  %v4616_v18 = vpop.f32.mrf.mxu1 }
 0x266   : > { %v1118_v57 = vrot.slane %v1096_v47, %v4391_v3  ;;  %v1126_v58 = vcombine.high %v1104_v48, %v1104_v48  ;;  %1195 = vst.msk [vmem:[%s4397_s25 + $0x3] sm:$0x1] %vm549_vm3, %v1104_v48  ;;  %1210 = vst.msk [vmem:[%s4397_s25 + $0x7b] sm:$0x1] %vm549_vm3, %v1178_v51  ;;  %v1360_v60 = vcombine.high %v1352_v49, %v1352_v49 }
 0x267   : > { %v1361_v61 = vcombine.high %v1359_v52, %v1359_v52  ;;  %v1368_v62 = vrot.slane %v1352_v49, %v4391_v3  ;;  %v1375_v63 = vrot.slane %v1359_v52, %v4391_v3  ;;  %v1125_v0 = vrot.slane %v1097_v55, %v4391_v3  ;;  %1199 = vst.msk [vmem:[%s4397_s25 + $0x23] sm:$0x1] %vm549_vm3, %v1111_v56  ;;  %v4648_v35 = vpop.f32.mrf.mxu1 }
 0x268   : > { %v1127_v1 = vcombine.high %v1111_v56, %v1111_v56  ;;  %v1128_v2 = vcombine.high %v1118_v57, %v1118_v57  ;;  %1196 = vst.msk [vmem:[%s4397_s25 + $0xb] sm:$0x1] %vm549_vm3, %v1118_v57  ;;  %1197 = vst.msk [vmem:[%s4397_s25 + $0x13] sm:$0x1] %vm549_vm3, %v1126_v58  ;;  %v1310_v4 = vrot.slane %v1296_v53, %v4391_v3 }
 0x269   : > { %v1382_v6 = vrot.slane %v1360_v60, %v4391_v3  ;;  %v1389_v7 = vrot.slane %v1361_v61, %v4391_v3  ;;  %v1390_v8 = vcombine.high %v1368_v62, %v1368_v62  ;;  %v1391_v9 = vcombine.high %v1375_v63, %v1375_v63  ;;  %1418 = vst.msk [vmem:[%s4397_s25 + $0x44] sm:$0x1] %vm549_vm3, %v1368_v62  ;;  %v4681_v53 = vpop.f32.mrf.mxu1 }
 0x26a   : > { %1422 = vst.msk [vmem:[%s4397_s25 + $0x64] sm:$0x1] %vm549_vm3, %v1375_v63  ;;  %v1129_v10 = vcombine.high %v1125_v0, %v1125_v0  ;;  %1198 = vst.msk [vmem:[%s4397_s25 + $0x1b] sm:$0x1] %vm549_vm3, %v1128_v2  ;;  %v1311_v11 = vcombine.high %v1303_v54, %v1303_v54  ;;  %v1312_v12 = vcombine.high %v1310_v4, %v1310_v4 }
 0x26b   : > { %1200 = vst.msk [vmem:[%s4397_s25 + $0x2b] sm:$0x1] %vm549_vm3, %v1125_v0  ;;  %1201 = vst.msk [vmem:[%s4397_s25 + $0x33] sm:$0x1] %vm549_vm3, %v1127_v1  ;;  %v1319_v13 = vrot.slane %v1303_v54, %v4391_v3  ;;  %v1392_v14 = vcombine.high %v1382_v6, %v1382_v6  ;;  %v1393_v15 = vcombine.high %v1389_v7, %v1389_v7 }
 0x26c   : > { %1419 = vst.msk [vmem:[%s4397_s25 + $0x4c] sm:$0x1] %vm549_vm3, %v1382_v6  ;;  %1420 = vst.msk [vmem:[%s4397_s25 + $0x54] sm:$0x1] %vm549_vm3, %v1390_v8  ;;  %v1326_v16 = vrot.slane %v1310_v4, %v4391_v3  ;;  %v1560_v17 = vcombine.high %v4523_v32, %v4523_v32  ;;  %v1333_v19 = vrot.slane %v1311_v11, %v4391_v3 }
 0x26d   : > { %1423 = vst.msk [vmem:[%s4397_s25 + $0x6c] sm:$0x1] %vm549_vm3, %v1389_v7  ;;  %1424 = vst.msk [vmem:[%s4397_s25 + $0x74] sm:$0x1] %vm549_vm3, %v1391_v9  ;;  %v1340_v20 = vrot.slane %v1312_v12, %v4391_v3  ;;  %v1341_v21 = vcombine.high %v1319_v13, %v1319_v13  ;;  %v1567_v22 = vrot.slane %v4523_v32, %v4391_v3  ;;  %v4715_v7 = vpop.f32.mrf.mxu1 }
 0x26e   : > { %1202 = vst.msk [vmem:[%s4397_s25 + $0x3b] sm:$0x1] %vm549_vm3, %v1129_v10  ;;  %1410 = vst.msk [vmem:[%s4397_s25 + $0x4] sm:$0x1] %vm549_vm3, %v1319_v13  ;;  %v1342_v23 = vcombine.high %v1326_v16, %v1326_v16  ;;  %v1574_v24 = vrot.slane %v1560_v17, %v4391_v3  ;;  %v1511_v25 = vcombine.high %v4543_v41, %v4543_v41 }
 0x26f   : > { %1421 = vst.msk [vmem:[%s4397_s25 + $0x5c] sm:$0x1] %vm549_vm3, %v1392_v14  ;;  %1425 = vst.msk [vmem:[%s4397_s25 + $0x7c] sm:$0x1] %vm549_vm3, %v1393_v15  ;;  %v1518_v26 = vrot.slane %v4543_v41, %v4391_v3  ;;  %v1343_v27 = vcombine.high %v1333_v19, %v1333_v19  ;;  %v1344_v28 = vcombine.high %v1340_v20, %v1340_v20 }
 0x270   : > { %1414 = vst.msk [vmem:[%s4397_s25 + $0x24] sm:$0x1] %vm549_vm3, %v1326_v16  ;;  %1411 = vst.msk [vmem:[%s4397_s25 + $0xc] sm:$0x1] %vm549_vm3, %v1333_v19  ;;  %v1575_v29 = vcombine.high %v1567_v22, %v1567_v22  ;;  %v1583_v30 = vrot.slane %v1567_v22, %v4391_v3  ;;  %v1576_v31 = vcombine.high %v1574_v24, %v1574_v24 }
 0x271   : > { %1412 = vst.msk [vmem:[%s4397_s25 + $0x14] sm:$0x1] %vm549_vm3, %v1341_v21  ;;  %1415 = vst.msk [vmem:[%s4397_s25 + $0x2c] sm:$0x1] %vm549_vm3, %v1340_v20  ;;  %v1590_v32 = vrot.slane %v1574_v24, %v4391_v3  ;;  %v1525_v33 = vrot.slane %v1511_v25, %v4391_v3  ;;  %v1526_v34 = vcombine.high %v1518_v26, %v1518_v26  ;;  %v4747_v24 = vpop.f32.mrf.mxu1 }
 0x272   : > { %1416 = vst.msk [vmem:[%s4397_s25 + $0x34] sm:$0x1] %vm549_vm3, %v1342_v23  ;;  %1413 = vst.msk [vmem:[%s4397_s25 + $0x1c] sm:$0x1] %vm549_vm3, %v1343_v27  ;;  %v1597_v36 = vrot.slane %v1575_v29, %v4391_v3  ;;  %v1605_v37 = vcombine.high %v1583_v30, %v1583_v30  ;;  %v1534_v38 = vrot.slane %v1518_v26, %v4391_v3 }
 0x273   : > { %1417 = vst.msk [vmem:[%s4397_s25 + $0x3c] sm:$0x1] %vm549_vm3, %v1344_v28  ;;  %1633 = vst.msk [vmem:[%s4397_s25 + $0x45] sm:$0x1] %vm549_vm3, %v1583_v30  ;;  %v1775_v39 = vcombine.high %v4559_v50, %v4559_v50  ;;  %v1604_v40 = vrot.slane %v1576_v31, %v4391_v3  ;;  %v1606_v41 = vcombine.high %v1590_v32, %v1590_v32 }
 0x274   : > { %1637 = vst.msk [vmem:[%s4397_s25 + $0x65] sm:$0x1] %vm549_vm3, %v1590_v32  ;;  %v1527_v42 = vcombine.high %v1525_v33, %v1525_v33  ;;  %v1541_v43 = vrot.slane %v1525_v33, %v4391_v3  ;;  %v1607_v44 = vcombine.high %v1597_v36, %v1597_v36  ;;  %1634 = vst.msk [vmem:[%s4397_s25 + $0x4d] sm:$0x1] %vm549_vm3, %v1597_v36 }
 0x275   : > { %1635 = vst.msk [vmem:[%s4397_s25 + $0x55] sm:$0x1] %vm549_vm3, %v1605_v37  ;;  %v1548_v45 = vrot.slane %v1526_v34, %v4391_v3  ;;  %v1556_v46 = vcombine.high %v1534_v38, %v1534_v38  ;;  %1625 = vst.msk [vmem:[%s4397_s25 + $0x5] sm:$0x1] %vm549_vm3, %v1534_v38  ;;  %v1782_v47 = vrot.slane %v4559_v50, %v4391_v3 }
 0x276   : > { %v1608_v48 = vcombine.high %v1604_v40, %v1604_v40  ;;  %1638 = vst.msk [vmem:[%s4397_s25 + $0x6d] sm:$0x1] %vm549_vm3, %v1604_v40  ;;  %1639 = vst.msk [vmem:[%s4397_s25 + $0x75] sm:$0x1] %vm549_vm3, %v1606_v41  ;;  %v1555_v49 = vrot.slane %v1527_v42, %v4391_v3  ;;  %v1557_v51 = vcombine.high %v1541_v43, %v1541_v43  ;;  %v4781_v41 = vpop.f32.mrf.mxu1 }
 0x277   : > { %1629 = vst.msk [vmem:[%s4397_s25 + $0x25] sm:$0x1] %vm549_vm3, %v1541_v43  ;;  %v1789_v52 = vrot.slane %v1775_v39, %v4391_v3  ;;  %1636 = vst.msk [vmem:[%s4397_s25 + $0x5d] sm:$0x1] %vm549_vm3, %v1607_v44  ;;  %v1558_v50 = vcombine.high %v1548_v45, %v1548_v45  ;;  %v1790_v54 = vcombine.high %v1782_v47, %v1782_v47 }
 0x278   : > { %1626 = vst.msk [vmem:[%s4397_s25 + $0xd] sm:$0x1] %vm549_vm3, %v1548_v45  ;;  %1627 = vst.msk [vmem:[%s4397_s25 + $0x15] sm:$0x1] %vm549_vm3, %v1556_v46  ;;  %v1798_v55 = vrot.slane %v1782_v47, %v4391_v3  ;;  %v1726_v56 = vcombine.high %v4576_v59, %v4576_v59  ;;  %v1559_v57 = vcombine.high %v1555_v49, %v1555_v49 }
 0x279   : > { %1640 = vst.msk [vmem:[%s4397_s25 + $0x7d] sm:$0x1] %vm549_vm3, %v1608_v48  ;;  %1630 = vst.msk [vmem:[%s4397_s25 + $0x2d] sm:$0x1] %vm549_vm3, %v1555_v49  ;;  %v1791_v58 = vcombine.high %v1789_v52, %v1789_v52  ;;  %v1805_v60 = vrot.slane %v1789_v52, %v4391_v3  ;;  %v1733_v61 = vrot.slane %v4576_v59, %v4391_v3 }
 0x27a   : > { %1631 = vst.msk [vmem:[%s4397_s25 + $0x35] sm:$0x1] %vm549_vm3, %v1557_v51  ;;  %1628 = vst.msk [vmem:[%s4397_s25 + $0x1d] sm:$0x1] %vm549_vm3, %v1558_v50  ;;  %v1812_v62 = vrot.slane %v1790_v54, %v4391_v3  ;;  %v1820_v63 = vcombine.high %v1798_v55, %v1798_v55  ;;  %v1740_v0 = vrot.slane %v1726_v56, %v4391_v3 }
 0x27b   : > { %1848 = vst.msk [vmem:[%s4397_s25 + $0x46] sm:$0x1] %vm549_vm3, %v1798_v55  ;;  %v1990_v1 = vcombine.high %v4590_v5, %v4590_v5  ;;  %1632 = vst.msk [vmem:[%s4397_s25 + $0x3d] sm:$0x1] %vm549_vm3, %v1559_v57  ;;  %v1819_v2 = vrot.slane %v1791_v58, %v4391_v3  ;;  %v1821_v59 = vcombine.high %v1805_v60, %v1805_v60  ;;  %v4813_v58 = vpop.f32.mrf.mxu1 }
 0x27c   : > { %1852 = vst.msk [vmem:[%s4397_s25 + $0x66] sm:$0x1] %vm549_vm3, %v1805_v60  ;;  %v1741_v4 = vcombine.high %v1733_v61, %v1733_v61  ;;  %v1749_v6 = vrot.slane %v1733_v61, %v4391_v3  ;;  %v1822_v8 = vcombine.high %v1812_v62, %v1812_v62  ;;  %1849 = vst.msk [vmem:[%s4397_s25 + $0x4e] sm:$0x1] %vm549_vm3, %v1812_v62 }
 0x27d   : > { %1850 = vst.msk [vmem:[%s4397_s25 + $0x56] sm:$0x1] %vm549_vm3, %v1820_v63  ;;  %v1742_v9 = vcombine.high %v1740_v0, %v1740_v0  ;;  %v1756_v10 = vrot.slane %v1740_v0, %v4391_v3  ;;  %v1997_v11 = vrot.slane %v4590_v5, %v4391_v3  ;;  %v1823_v12 = vcombine.high %v1819_v2, %v1819_v2 }
 0x27e   : > { %1853 = vst.msk [vmem:[%s4397_s25 + $0x6e] sm:$0x1] %vm549_vm3, %v1819_v2  ;;  %1854 = vst.msk [vmem:[%s4397_s25 + $0x76] sm:$0x1] %vm549_vm3, %v1821_v59  ;;  %v1763_v13 = vrot.slane %v1741_v4, %v4391_v3  ;;  %v1771_v14 = vcombine.high %v1749_v6, %v1749_v6  ;;  %v2004_v15 = vrot.slane %v1990_v1, %v4391_v3 }
 0x27f   : > { %1840 = vst.msk [vmem:[%s4397_s25 + $0x6] sm:$0x1] %vm549_vm3, %v1749_v6  ;;  %1851 = vst.msk [vmem:[%s4397_s25 + $0x5e] sm:$0x1] %vm549_vm3, %v1822_v8  ;;  %v1770_v5 = vrot.slane %v1742_v9, %v4391_v3  ;;  %v1772_v16 = vcombine.high %v1756_v10, %v1756_v10  ;;  %v2005_v17 = vcombine.high %v1997_v11, %v1997_v11 }
 0x280   : > { %1844 = vst.msk [vmem:[%s4397_s25 + $0x26] sm:$0x1] %vm549_vm3, %v1756_v10  ;;  %v2013_v19 = vrot.slane %v1997_v11, %v4391_v3  ;;  %1855 = vst.msk [vmem:[%s4397_s25 + $0x7e] sm:$0x1] %vm549_vm3, %v1823_v12  ;;  %v1773_v20 = vcombine.high %v1763_v13, %v1763_v13  ;;  %v2006_v21 = vcombine.high %v2004_v15, %v2004_v15  ;;  %v4847_v12 = vpop.f32.mrf.mxu1 }
 0x281   : > { %1841 = vst.msk [vmem:[%s4397_s25 + $0xe] sm:$0x1] %vm549_vm3, %v1763_v13  ;;  %1842 = vst.msk [vmem:[%s4397_s25 + $0x16] sm:$0x1] %vm549_vm3, %v1771_v14  ;;  %v2020_v22 = vrot.slane %v2004_v15, %v4391_v3  ;;  %v1941_v23 = vcombine.high %v4616_v18, %v4616_v18  ;;  %v1774_v25 = vcombine.high %v1770_v5, %v1770_v5 }
 0x282   : > { %1845 = vst.msk [vmem:[%s4397_s25 + $0x2e] sm:$0x1] %vm549_vm3, %v1770_v5  ;;  %1846 = vst.msk [vmem:[%s4397_s25 + $0x36] sm:$0x1] %vm549_vm3, %v1772_v16  ;;  %v2027_v26 = vrot.slane %v2005_v17, %v4391_v3  ;;  %v2035_v27 = vcombine.high %v2013_v19, %v2013_v19  ;;  %v1948_v28 = vrot.slane %v4616_v18, %v4391_v3 }
 0x283   : > { %2063 = vst.msk [vmem:[%s4397_s25 + $0x47] sm:$0x1] %vm549_vm3, %v2013_v19  ;;  %1843 = vst.msk [vmem:[%s4397_s25 + $0x1e] sm:$0x1] %vm549_vm3, %v1773_v20  ;;  %v2034_v29 = vrot.slane %v2006_v21, %v4391_v3  ;;  %v2036_v30 = vcombine.high %v2020_v22, %v2020_v22  ;;  %v1955_v31 = vrot.slane %v1941_v23, %v4391_v3 }
 0x284   : > { %2067 = vst.msk [vmem:[%s4397_s25 + $0x67] sm:$0x1] %vm549_vm3, %v2020_v22  ;;  %v2205_v32 = vcombine.high %v4648_v35, %v4648_v35  ;;  %1847 = vst.msk [vmem:[%s4397_s25 + $0x3e] sm:$0x1] %vm549_vm3, %v1774_v25  ;;  %v2037_v33 = vcombine.high %v2027_v26, %v2027_v26  ;;  %v1956_v18 = vcombine.high %v1948_v28, %v1948_v28 }
 0x285   : > { %2064 = vst.msk [vmem:[%s4397_s25 + $0x4f] sm:$0x1] %vm549_vm3, %v2027_v26  ;;  %2065 = vst.msk [vmem:[%s4397_s25 + $0x57] sm:$0x1] %vm549_vm3, %v2035_v27  ;;  %v1964_v34 = vrot.slane %v1948_v28, %v4391_v3  ;;  %v2212_v36 = vrot.slane %v4648_v35, %v4391_v3  ;;  %v2038_v37 = vcombine.high %v2034_v29, %v2034_v29 }
 0x286   : > { %2068 = vst.msk [vmem:[%s4397_s25 + $0x6f] sm:$0x1] %vm549_vm3, %v2034_v29  ;;  %2069 = vst.msk [vmem:[%s4397_s25 + $0x77] sm:$0x1] %vm549_vm3, %v2036_v30  ;;  %v1957_v38 = vcombine.high %v1955_v31, %v1955_v31  ;;  %v1971_v39 = vrot.slane %v1955_v31, %v4391_v3  ;;  %v2219_v40 = vrot.slane %v2205_v32, %v4391_v3  ;;  %v4876_v29 = vpop.f32.mrf.mxu1 }
 0x287   : > { %2066 = vst.msk [vmem:[%s4397_s25 + $0x5f] sm:$0x1] %vm549_vm3, %v2037_v33  ;;  %v1978_v42 = vrot.slane %v1956_v18, %v4391_v3  ;;  %v1986_v35 = vcombine.high %v1964_v34, %v1964_v34  ;;  %2055 = vst.msk [vmem:[%s4397_s25 + $0x7] sm:$0x1] %vm549_vm3, %v1964_v34  ;;  %v2220_v43 = vcombine.high %v2212_v36, %v2212_v36 }
 0x288   : > { %v2228_v44 = vrot.slane %v2212_v36, %v4391_v3  ;;  %2070 = vst.msk [vmem:[%s4397_s25 + $0x7f] sm:$0x1] %vm549_vm3, %v2038_v37  ;;  %v1985_v45 = vrot.slane %v1957_v38, %v4391_v3  ;;  %v1987_v46 = vcombine.high %v1971_v39, %v1971_v39  ;;  %2059 = vst.msk [vmem:[%s4397_s25 + $0x27] sm:$0x1] %vm549_vm3, %v1971_v39 }
 0x289   : > { %v2221_v47 = vcombine.high %v2219_v40, %v2219_v40  ;;  %v2235_v48 = vrot.slane %v2219_v40, %v4391_v3  ;;  %v1988_v49 = vcombine.high %v1978_v42, %v1978_v42  ;;  %2056 = vst.msk [vmem:[%s4397_s25 + $0xf] sm:$0x1] %vm549_vm3, %v1978_v42  ;;  %2057 = vst.msk [vmem:[%s4397_s25 + $0x17] sm:$0x1] %vm549_vm3, %v1986_v35 }
 0x28a   : > { %v2242_v51 = vrot.slane %v2220_v43, %v4391_v3  ;;  %v2250_v52 = vcombine.high %v2228_v44, %v2228_v44  ;;  %3896 = vst.msk [vmem:[%s4397_s25 + $0xc0] sm:$0x1] %vm549_vm3, %v2228_v44  ;;  %v2156_v50 = vcombine.high %v4681_v53, %v4681_v53  ;;  %v1989_v54 = vcombine.high %v1985_v45, %v1985_v45 }
 0x28b   : > { %2060 = vst.msk [vmem:[%s4397_s25 + $0x2f] sm:$0x1] %vm549_vm3, %v1985_v45  ;;  %2061 = vst.msk [vmem:[%s4397_s25 + $0x37] sm:$0x1] %vm549_vm3, %v1987_v46  ;;  %v2249_v55 = vrot.slane %v2221_v47, %v4391_v3  ;;  %v2251_v56 = vcombine.high %v2235_v48, %v2235_v48  ;;  %v2163_v57 = vrot.slane %v4681_v53, %v4391_v3  ;;  %v4915_v45 = vpop.f32.mrf.mxu1 }
 0x28c   : > { %3900 = vst.msk [vmem:[%s4397_s25 + $0xe0] sm:$0x1] %vm549_vm3, %v2235_v48  ;;  %2058 = vst.msk [vmem:[%s4397_s25 + $0x1f] sm:$0x1] %vm549_vm3, %v1988_v49  ;;  %v2252_v60 = vcombine.high %v2242_v51, %v2242_v51  ;;  %v2170_v61 = vrot.slane %v2156_v50, %v4391_v3  ;;  %v2421_v62 = vcombine.high %v4715_v7, %v4715_v7 }
 0x28d   : > { %3897 = vst.msk [vmem:[%s4397_s25 + $0xc8] sm:$0x1] %vm549_vm3, %v2242_v51  ;;  %3898 = vst.msk [vmem:[%s4397_s25 + $0xd0] sm:$0x1] %vm549_vm3, %v2250_v52  ;;  %v2428_v63 = vrot.slane %v4715_v7, %v4391_v3  ;;  %v2253_v53 = vcombine.high %v2249_v55, %v2249_v55  ;;  %v2171_v0 = vcombine.high %v2163_v57, %v2163_v57 }
 0x28e   : > { %2062 = vst.msk [vmem:[%s4397_s25 + $0x3f] sm:$0x1] %vm549_vm3, %v1989_v54  ;;  %3901 = vst.msk [vmem:[%s4397_s25 + $0xe8] sm:$0x1] %vm549_vm3, %v2249_v55  ;;  %v2179_v1 = vrot.slane %v2163_v57, %v4391_v3  ;;  %v2372_v2 = vcombine.high %v4747_v24, %v4747_v24  ;;  %v2172_v59 = vcombine.high %v2170_v61, %v2170_v61 }
 0x28f   : > { %3902 = vst.msk [vmem:[%s4397_s25 + $0xf0] sm:$0x1] %vm549_vm3, %v2251_v56  ;;  %3899 = vst.msk [vmem:[%s4397_s25 + $0xd8] sm:$0x1] %vm549_vm3, %v2252_v60  ;;  %v2186_v4 = vrot.slane %v2170_v61, %v4391_v3  ;;  %v2435_v6 = vrot.slane %v2421_v62, %v4391_v3  ;;  %v2436_v7 = vcombine.high %v2428_v63, %v2428_v63 }
 0x290   : > { %3903 = vst.msk [vmem:[%s4397_s25 + $0xf8] sm:$0x1] %vm549_vm3, %v2253_v53  ;;  %v2193_v8 = vrot.slane %v2171_v0, %v4391_v3  ;;  %v2201_v9 = vcombine.high %v2179_v1, %v2179_v1  ;;  %3888 = vst.msk [vmem:[%s4397_s25 + $0x80] sm:$0x1] %vm549_vm3, %v2179_v1  ;;  %v2444_v10 = vrot.slane %v2428_v63, %v4391_v3  ;;  %v4942_v53 = vpop.f32.mrf.mxu1 }
 0x291   : > { %v2379_v11 = vrot.slane %v4747_v24, %v4391_v3  ;;  %v2200_v13 = vrot.slane %v2172_v59, %v4391_v3  ;;  %v2202_v14 = vcombine.high %v2186_v4, %v2186_v4  ;;  %3892 = vst.msk [vmem:[%s4397_s25 + $0xa0] sm:$0x1] %vm549_vm3, %v2186_v4  ;;  %v2437_v15 = vcombine.high %v2435_v6, %v2435_v6 }
 0x292   : > { %v2451_v5 = vrot.slane %v2435_v6, %v4391_v3  ;;  %v2203_v16 = vcombine.high %v2193_v8, %v2193_v8  ;;  %3889 = vst.msk [vmem:[%s4397_s25 + $0x88] sm:$0x1] %vm549_vm3, %v2193_v8  ;;  %3890 = vst.msk [vmem:[%s4397_s25 + $0x90] sm:$0x1] %vm549_vm3, %v2201_v9  ;;  %v2458_v17 = vrot.slane %v2436_v7, %v4391_v3 }
 0x293   : > { %v2466_v19 = vcombine.high %v2444_v10, %v2444_v10  ;;  %3914 = vst.msk [vmem:[%s4397_s25 + $0xc1] sm:$0x1] %vm549_vm3, %v2444_v10  ;;  %v2386_v20 = vrot.slane %v2372_v2, %v4391_v3  ;;  %v2204_v21 = vcombine.high %v2200_v13, %v2200_v13  ;;  %3893 = vst.msk [vmem:[%s4397_s25 + $0xa8] sm:$0x1] %vm549_vm3, %v2200_v13 }
 0x294   : > { %3894 = vst.msk [vmem:[%s4397_s25 + $0xb0] sm:$0x1] %vm549_vm3, %v2202_v14  ;;  %v2465_v22 = vrot.slane %v2437_v15, %v4391_v3  ;;  %v2467_v23 = vcombine.high %v2451_v5, %v2451_v5  ;;  %3918 = vst.msk [vmem:[%s4397_s25 + $0xe1] sm:$0x1] %vm549_vm3, %v2451_v5  ;;  %v2387_v24 = vcombine.high %v2379_v11, %v2379_v11 }
 0x295   : > { %3891 = vst.msk [vmem:[%s4397_s25 + $0x98] sm:$0x1] %vm549_vm3, %v2203_v16  ;;  %v2468_v25 = vcombine.high %v2458_v17, %v2458_v17  ;;  %3915 = vst.msk [vmem:[%s4397_s25 + $0xc9] sm:$0x1] %vm549_vm3, %v2458_v17  ;;  %v2388_v26 = vcombine.high %v2386_v20, %v2386_v20  ;;  %v2395_v27 = vrot.slane %v2379_v11, %v4391_v3  ;;  %v4179_v16 = vpop.f32.mrf.mxu1 }
 0x296   : > { %3916 = vst.msk [vmem:[%s4397_s25 + $0xd1] sm:$0x1] %vm549_vm3, %v2466_v19  ;;  %v2402_v28 = vrot.slane %v2386_v20, %v4391_v3  ;;  %3895 = vst.msk [vmem:[%s4397_s25 + $0xb8] sm:$0x1] %vm549_vm3, %v2204_v21  ;;  %v2469_v30 = vcombine.high %v2465_v22, %v2465_v22  ;;  %v2409_v31 = vrot.slane %v2387_v24, %v4391_v3 }
 0x297   : > { %3919 = vst.msk [vmem:[%s4397_s25 + $0xe9] sm:$0x1] %vm549_vm3, %v2465_v22  ;;  %3920 = vst.msk [vmem:[%s4397_s25 + $0xf1] sm:$0x1] %vm549_vm3, %v2467_v23  ;;  %v2636_v32 = vcombine.high %v4781_v41, %v4781_v41  ;;  %v2643_v33 = vrot.slane %v4781_v41, %v4391_v3  ;;  %v2416_v18 = vrot.slane %v2388_v26, %v4391_v3 }
 0x298   : > { %3917 = vst.msk [vmem:[%s4397_s25 + $0xd9] sm:$0x1] %vm549_vm3, %v2468_v25  ;;  %v2417_v34 = vcombine.high %v2395_v27, %v2395_v27  ;;  %v2418_v36 = vcombine.high %v2402_v28, %v2402_v28  ;;  %3906 = vst.msk [vmem:[%s4397_s25 + $0x81] sm:$0x1] %vm549_vm3, %v2395_v27  ;;  %v2587_v37 = vcombine.high %v4813_v58, %v4813_v58 }
 0x299   : > { %3910 = vst.msk [vmem:[%s4397_s25 + $0xa1] sm:$0x1] %vm549_vm3, %v2402_v28  ;;  %3921 = vst.msk [vmem:[%s4397_s25 + $0xf9] sm:$0x1] %vm549_vm3, %v2469_v30  ;;  %v2419_v38 = vcombine.high %v2409_v31, %v2409_v31  ;;  %v2650_v39 = vrot.slane %v2636_v32, %v4391_v3  ;;  %v2651_v40 = vcombine.high %v2643_v33, %v2643_v33 }
 0x29a   : > { %3907 = vst.msk [vmem:[%s4397_s25 + $0x89] sm:$0x1] %vm549_vm3, %v2409_v31  ;;  %v2659_v41 = vrot.slane %v2643_v33, %v4391_v3  ;;  %v2420_v42 = vcombine.high %v2416_v18, %v2416_v18  ;;  %3908 = vst.msk [vmem:[%s4397_s25 + $0x91] sm:$0x1] %vm549_vm3, %v2417_v34  ;;  %v2594_v35 = vrot.slane %v4813_v58, %v4391_v3 }
 0x29b   : > { %3911 = vst.msk [vmem:[%s4397_s25 + $0xa9] sm:$0x1] %vm549_vm3, %v2416_v18  ;;  %3912 = vst.msk [vmem:[%s4397_s25 + $0xb1] sm:$0x1] %vm549_vm3, %v2418_v36  ;;  %v2601_v43 = vrot.slane %v2587_v37, %v4391_v3  ;;  %v2851_v44 = vcombine.high %v4847_v12, %v4847_v12  ;;  %v2652_v46 = vcombine.high %v2650_v39, %v2650_v39  ;;  %v5008_v18 = vpop.f32.mrf.mxu1 }
 0x29c   : > { %3909 = vst.msk [vmem:[%s4397_s25 + $0x99] sm:$0x1] %vm549_vm3, %v2419_v38  ;;  %v2666_v47 = vrot.slane %v2650_v39, %v4391_v3  ;;  %v2673_v48 = vrot.slane %v2651_v40, %v4391_v3  ;;  %v2681_v49 = vcombine.high %v2659_v41, %v2659_v41  ;;  %3932 = vst.msk [vmem:[%s4397_s25 + $0xc2] sm:$0x1] %vm549_vm3, %v2659_v41 }
 0x29d   : > { %3913 = vst.msk [vmem:[%s4397_s25 + $0xb9] sm:$0x1] %vm549_vm3, %v2420_v42  ;;  %v2602_v51 = vcombine.high %v2594_v35, %v2594_v35  ;;  %v2603_v52 = vcombine.high %v2601_v43, %v2601_v43  ;;  %v2610_v50 = vrot.slane %v2594_v35, %v4391_v3  ;;  %v2617_v54 = vrot.slane %v2601_v43, %v4391_v3 }
 0x29e   : > { %v2680_v55 = vrot.slane %v2652_v46, %v4391_v3  ;;  %v2682_v56 = vcombine.high %v2666_v47, %v2666_v47  ;;  %v2683_v57 = vcombine.high %v2673_v48, %v2673_v48  ;;  %3933 = vst.msk [vmem:[%s4397_s25 + $0xca] sm:$0x1] %vm549_vm3, %v2673_v48  ;;  %3934 = vst.msk [vmem:[%s4397_s25 + $0xd2] sm:$0x1] %vm549_vm3, %v2681_v49 }
 0x29f   : > { %3936 = vst.msk [vmem:[%s4397_s25 + $0xe2] sm:$0x1] %vm549_vm3, %v2666_v47  ;;  %v2858_v58 = vrot.slane %v4847_v12, %v4391_v3  ;;  %v2624_v60 = vrot.slane %v2602_v51, %v4391_v3  ;;  %v2631_v61 = vrot.slane %v2603_v52, %v4391_v3  ;;  %v2632_v62 = vcombine.high %v2610_v50, %v2610_v50  ;;  %v4184_v51 = vpop.f32.mrf.mxu1 }
 0x2a0   : > { %v2633_v63 = vcombine.high %v2617_v54, %v2617_v54  ;;  %3924 = vst.msk [vmem:[%s4397_s25 + $0x82] sm:$0x1] %vm549_vm3, %v2610_v50  ;;  %3928 = vst.msk [vmem:[%s4397_s25 + $0xa2] sm:$0x1] %vm549_vm3, %v2617_v54  ;;  %v2684_v0 = vcombine.high %v2680_v55, %v2680_v55  ;;  %v2865_v1 = vrot.slane %v2851_v44, %v4391_v3 }
 0x2a1   : > { %3935 = vst.msk [vmem:[%s4397_s25 + $0xda] sm:$0x1] %vm549_vm3, %v2683_v57  ;;  %3937 = vst.msk [vmem:[%s4397_s25 + $0xea] sm:$0x1] %vm549_vm3, %v2680_v55  ;;  %v2866_v2 = vcombine.high %v2858_v58, %v2858_v58  ;;  %v2874_v59 = vrot.slane %v2858_v58, %v4391_v3  ;;  %v2634_v4 = vcombine.high %v2624_v60, %v2624_v60 }
 0x2a2   : > { %3938 = vst.msk [vmem:[%s4397_s25 + $0xf2] sm:$0x1] %vm549_vm3, %v2682_v56  ;;  %v2635_v6 = vcombine.high %v2631_v61, %v2631_v61  ;;  %3925 = vst.msk [vmem:[%s4397_s25 + $0x8a] sm:$0x1] %vm549_vm3, %v2624_v60  ;;  %v2802_v7 = vcombine.high %v4876_v29, %v4876_v29  ;;  %v2809_v8 = vrot.slane %v4876_v29, %v4391_v3 }
 0x2a3   : > { %3926 = vst.msk [vmem:[%s4397_s25 + $0x92] sm:$0x1] %vm549_vm3, %v2632_v62  ;;  %3929 = vst.msk [vmem:[%s4397_s25 + $0xaa] sm:$0x1] %vm549_vm3, %v2631_v61  ;;  %v2867_v9 = vcombine.high %v2865_v1, %v2865_v1  ;;  %v2881_v10 = vrot.slane %v2865_v1, %v4391_v3  ;;  %v2888_v11 = vrot.slane %v2866_v2, %v4391_v3 }
 0x2a4   : > { %3930 = vst.msk [vmem:[%s4397_s25 + $0xb2] sm:$0x1] %vm549_vm3, %v2633_v63  ;;  %3939 = vst.msk [vmem:[%s4397_s25 + $0xfa] sm:$0x1] %vm549_vm3, %v2684_v0  ;;  %v2896_v12 = vcombine.high %v2874_v59, %v2874_v59  ;;  %v2816_v13 = vrot.slane %v2802_v7, %v4391_v3  ;;  %v2817_v14 = vcombine.high %v2809_v8, %v2809_v8 }
 0x2a5   : > { %3950 = vst.msk [vmem:[%s4397_s25 + $0xc3] sm:$0x1] %vm549_vm3, %v2874_v59  ;;  %3927 = vst.msk [vmem:[%s4397_s25 + $0x9a] sm:$0x1] %vm549_vm3, %v2634_v4  ;;  %v2825_v15 = vrot.slane %v2809_v8, %v4391_v3  ;;  %v3066_v5 = vcombine.high %v4915_v45, %v4915_v45  ;;  %v2895_v17 = vrot.slane %v2867_v9, %v4391_v3  ;;  %v3436_v4 = vpop.f32.mrf.mxu1 }
 0x2a6   : > { %3931 = vst.msk [vmem:[%s4397_s25 + $0xba] sm:$0x1] %vm549_vm3, %v2635_v6  ;;  %v2897_v19 = vcombine.high %v2881_v10, %v2881_v10  ;;  %v2898_v20 = vcombine.high %v2888_v11, %v2888_v11  ;;  %3951 = vst.msk [vmem:[%s4397_s25 + $0xcb] sm:$0x1] %vm549_vm3, %v2888_v11  ;;  %v3073_v21 = vrot.slane %v4915_v45, %v4391_v3 }
 0x2a7   : > { %3952 = vst.msk [vmem:[%s4397_s25 + $0xd3] sm:$0x1] %vm549_vm3, %v2896_v12  ;;  %3954 = vst.msk [vmem:[%s4397_s25 + $0xe3] sm:$0x1] %vm549_vm3, %v2881_v10  ;;  %v2818_v22 = vcombine.high %v2816_v13, %v2816_v13  ;;  %v2832_v23 = vrot.slane %v2816_v13, %v4391_v3  ;;  %v2839_v24 = vrot.slane %v2817_v14, %v4391_v3 }
 0x2a8   : > { %v2847_v25 = vcombine.high %v2825_v15, %v2825_v15  ;;  %3942 = vst.msk [vmem:[%s4397_s25 + $0x83] sm:$0x1] %vm549_vm3, %v2825_v15  ;;  %v2899_v26 = vcombine.high %v2895_v17, %v2895_v17  ;;  %3953 = vst.msk [vmem:[%s4397_s25 + $0xdb] sm:$0x1] %vm549_vm3, %v2898_v20  ;;  %v3080_v27 = vrot.slane %v3066_v5, %v4391_v3 }
 0x2a9   : > { %3955 = vst.msk [vmem:[%s4397_s25 + $0xeb] sm:$0x1] %vm549_vm3, %v2895_v17  ;;  %3956 = vst.msk [vmem:[%s4397_s25 + $0xf3] sm:$0x1] %vm549_vm3, %v2897_v19  ;;  %v3081_v28 = vcombine.high %v3073_v21, %v3073_v21  ;;  %v3089_v29 = vrot.slane %v3073_v21, %v4391_v3  ;;  %v2846_v30 = vrot.slane %v2818_v22, %v4391_v3  ;;  %v4189_v22 = vpop.f32.mrf.mxu1 }
 0x2aa   : > { %v2848_v31 = vcombine.high %v2832_v23, %v2832_v23  ;;  %v2849_v32 = vcombine.high %v2839_v24, %v2839_v24  ;;  %3943 = vst.msk [vmem:[%s4397_s25 + $0x8b] sm:$0x1] %vm549_vm3, %v2839_v24  ;;  %3944 = vst.msk [vmem:[%s4397_s25 + $0x93] sm:$0x1] %vm549_vm3, %v2847_v25  ;;  %v3017_v33 = vcombine.high %v4942_v53, %v4942_v53 }
 0x2ab   : > { %3946 = vst.msk [vmem:[%s4397_s25 + $0xa3] sm:$0x1] %vm549_vm3, %v2832_v23  ;;  %3957 = vst.msk [vmem:[%s4397_s25 + $0xfb] sm:$0x1] %vm549_vm3, %v2899_v26  ;;  %v3082_v34 = vcombine.high %v3080_v27, %v3080_v27  ;;  %v3096_v36 = vrot.slane %v3080_v27, %v4391_v3  ;;  %v3103_v37 = vrot.slane %v3081_v28, %v4391_v3 }
 0x2ac   : > { %v3111_v38 = vcombine.high %v3089_v29, %v3089_v29  ;;  %3968 = vst.msk [vmem:[%s4397_s25 + $0xc4] sm:$0x1] %vm549_vm3, %v3089_v29  ;;  %v2850_v39 = vcombine.high %v2846_v30, %v2846_v30  ;;  %3945 = vst.msk [vmem:[%s4397_s25 + $0x9b] sm:$0x1] %vm549_vm3, %v2849_v32  ;;  %v3024_v40 = vrot.slane %v4942_v53, %v4391_v3 }
 0x2ad   : > { %3947 = vst.msk [vmem:[%s4397_s25 + $0xab] sm:$0x1] %vm549_vm3, %v2846_v30  ;;  %3948 = vst.msk [vmem:[%s4397_s25 + $0xb3] sm:$0x1] %vm549_vm3, %v2848_v31  ;;  %v3031_v41 = vrot.slane %v3017_v33, %v4391_v3  ;;  %v3281_v42 = vcombine.high %v4179_v16, %v4179_v16  ;;  %v3110_v35 = vrot.slane %v3082_v34, %v4391_v3 }
 0x2ae   : > { %v3112_v43 = vcombine.high %v3096_v36, %v3096_v36  ;;  %v3113_v44 = vcombine.high %v3103_v37, %v3103_v37  ;;  %3969 = vst.msk [vmem:[%s4397_s25 + $0xcc] sm:$0x1] %vm549_vm3, %v3103_v37  ;;  %3970 = vst.msk [vmem:[%s4397_s25 + $0xd4] sm:$0x1] %vm549_vm3, %v3111_v38  ;;  %v3288_v45 = vrot.slane %v4179_v16, %v4391_v3 }
 0x2af   : > { %3972 = vst.msk [vmem:[%s4397_s25 + $0xe4] sm:$0x1] %vm549_vm3, %v3096_v36  ;;  %3949 = vst.msk [vmem:[%s4397_s25 + $0xbb] sm:$0x1] %vm549_vm3, %v2850_v39  ;;  %v3032_v46 = vcombine.high %v3024_v40, %v3024_v40  ;;  %v3033_v47 = vcombine.high %v3031_v41, %v3031_v41  ;;  %v3040_v48 = vrot.slane %v3024_v40, %v4391_v3  ;;  %v3651_v39 = vpop.f32.mrf.mxu1 }
 0x2b0   : > { %v3047_v49 = vrot.slane %v3031_v41, %v4391_v3  ;;  %v3114_v52 = vcombine.high %v3110_v35, %v3110_v35  ;;  %3971 = vst.msk [vmem:[%s4397_s25 + $0xdc] sm:$0x1] %vm549_vm3, %v3113_v44  ;;  %3973 = vst.msk [vmem:[%s4397_s25 + $0xec] sm:$0x1] %vm549_vm3, %v3110_v35  ;;  %v3295_v50 = vrot.slane %v3281_v42, %v4391_v3 }
 0x2b1   : > { %3974 = vst.msk [vmem:[%s4397_s25 + $0xf4] sm:$0x1] %vm549_vm3, %v3112_v43  ;;  %v3296_v54 = vcombine.high %v3288_v45, %v3288_v45  ;;  %v3304_v55 = vrot.slane %v3288_v45, %v4391_v3  ;;  %v3054_v56 = vrot.slane %v3032_v46, %v4391_v3  ;;  %v3061_v57 = vrot.slane %v3033_v47, %v4391_v3 }
 0x2b2   : > { %v3062_v58 = vcombine.high %v3040_v48, %v3040_v48  ;;  %v3063_v60 = vcombine.high %v3047_v49, %v3047_v49  ;;  %3960 = vst.msk [vmem:[%s4397_s25 + $0x84] sm:$0x1] %vm549_vm3, %v3040_v48  ;;  %3964 = vst.msk [vmem:[%s4397_s25 + $0xa4] sm:$0x1] %vm549_vm3, %v3047_v49  ;;  %v3297_v61 = vcombine.high %v3295_v50, %v3295_v50 }
 0x2b3   : > { %3975 = vst.msk [vmem:[%s4397_s25 + $0xfc] sm:$0x1] %vm549_vm3, %v3114_v52  ;;  %v3311_v62 = vrot.slane %v3295_v50, %v4391_v3  ;;  %v3318_v63 = vrot.slane %v3296_v54, %v4391_v3  ;;  %v3326_v53 = vcombine.high %v3304_v55, %v3304_v55  ;;  %3986 = vst.msk [vmem:[%s4397_s25 + $0xc5] sm:$0x1] %vm549_vm3, %v3304_v55 }
 0x2b4   : > { %v3064_v0 = vcombine.high %v3054_v56, %v3054_v56  ;;  %v3065_v1 = vcombine.high %v3061_v57, %v3061_v57  ;;  %3961 = vst.msk [vmem:[%s4397_s25 + $0x8c] sm:$0x1] %vm549_vm3, %v3054_v56  ;;  %3962 = vst.msk [vmem:[%s4397_s25 + $0x94] sm:$0x1] %vm549_vm3, %v3062_v58  ;;  %v3232_v2 = vcombine.high %v5008_v18, %v5008_v18 }
 0x2b5   : > { %3965 = vst.msk [vmem:[%s4397_s25 + $0xac] sm:$0x1] %vm549_vm3, %v3061_v57  ;;  %3966 = vst.msk [vmem:[%s4397_s25 + $0xb4] sm:$0x1] %vm549_vm3, %v3063_v60  ;;  %v3239_v59 = vrot.slane %v5008_v18, %v4391_v3  ;;  %v3325_v6 = vrot.slane %v3297_v61, %v4391_v3  ;;  %v3327_v7 = vcombine.high %v3311_v62, %v3311_v62 }
 0x2b6   : > { %v3328_v8 = vcombine.high %v3318_v63, %v3318_v63  ;;  %3987 = vst.msk [vmem:[%s4397_s25 + $0xcd] sm:$0x1] %vm549_vm3, %v3318_v63  ;;  %3988 = vst.msk [vmem:[%s4397_s25 + $0xd5] sm:$0x1] %vm549_vm3, %v3326_v53  ;;  %v3496_v9 = vcombine.high %v4184_v51, %v4184_v51  ;;  %v3246_v10 = vrot.slane %v3232_v2, %v4391_v3 }
 0x2b7   : > { %3990 = vst.msk [vmem:[%s4397_s25 + $0xe5] sm:$0x1] %vm549_vm3, %v3311_v62  ;;  %3963 = vst.msk [vmem:[%s4397_s25 + $0x9c] sm:$0x1] %vm549_vm3, %v3064_v0  ;;  %v3247_v11 = vcombine.high %v3239_v59, %v3239_v59  ;;  %v3255_v12 = vrot.slane %v3239_v59, %v4391_v3  ;;  %v3503_v13 = vrot.slane %v4184_v51, %v4391_v3 }
 0x2b8   : > { %3967 = vst.msk [vmem:[%s4397_s25 + $0xbc] sm:$0x1] %vm549_vm3, %v3065_v1  ;;  %v3329_v14 = vcombine.high %v3325_v6, %v3325_v6  ;;  %3989 = vst.msk [vmem:[%s4397_s25 + $0xdd] sm:$0x1] %vm549_vm3, %v3328_v8  ;;  %v3510_v15 = vrot.slane %v3496_v9, %v4391_v3  ;;  %v3447_v5 = vcombine.high %v3436_v4, %v3436_v4 }
 0x2b9   : > { %3991 = vst.msk [vmem:[%s4397_s25 + $0xed] sm:$0x1] %vm549_vm3, %v3325_v6  ;;  %3992 = vst.msk [vmem:[%s4397_s25 + $0xf5] sm:$0x1] %vm549_vm3, %v3327_v7  ;;  %v3454_v16 = vrot.slane %v3436_v4, %v4391_v3  ;;  %v3248_v17 = vcombine.high %v3246_v10, %v3246_v10  ;;  %v3262_v19 = vrot.slane %v3246_v10, %v4391_v3 }
 0x2ba   : > { %v3269_v20 = vrot.slane %v3247_v11, %v4391_v3  ;;  %v3277_v21 = vcombine.high %v3255_v12, %v3255_v12  ;;  %3978 = vst.msk [vmem:[%s4397_s25 + $0x85] sm:$0x1] %vm549_vm3, %v3255_v12  ;;  %3993 = vst.msk [vmem:[%s4397_s25 + $0xfd] sm:$0x1] %vm549_vm3, %v3329_v14  ;;  %v3511_v23 = vcombine.high %v3503_v13, %v3503_v13 }
 0x2bb   : > { %v3512_v24 = vcombine.high %v3510_v15, %v3510_v15  ;;  %v3519_v25 = vrot.slane %v3503_v13, %v4391_v3  ;;  %v3526_v26 = vrot.slane %v3510_v15, %v4391_v3  ;;  %v3276_v27 = vrot.slane %v3248_v17, %v4391_v3  ;;  %3982 = vst.msk [vmem:[%s4397_s25 + $0xa5] sm:$0x1] %vm549_vm3, %v3262_v19 }
 0x2bc   : > { %v3278_v28 = vcombine.high %v3262_v19, %v3262_v19  ;;  %v3279_v29 = vcombine.high %v3269_v20, %v3269_v20  ;;  %3979 = vst.msk [vmem:[%s4397_s25 + $0x8d] sm:$0x1] %vm549_vm3, %v3269_v20  ;;  %3980 = vst.msk [vmem:[%s4397_s25 + $0x95] sm:$0x1] %vm549_vm3, %v3277_v21  ;;  %v3461_v30 = vrot.slane %v3447_v5, %v4391_v3 }
 0x2bd   : > { %v3533_v31 = vrot.slane %v3511_v23, %v4391_v3  ;;  %v3540_v32 = vrot.slane %v3512_v24, %v4391_v3  ;;  %v3541_v33 = vcombine.high %v3519_v25, %v3519_v25  ;;  %v3542_v18 = vcombine.high %v3526_v26, %v3526_v26  ;;  %4004 = vst.msk [vmem:[%s4397_s25 + $0xc6] sm:$0x1] %vm549_vm3, %v3519_v25 }
 0x2be   : > { %4008 = vst.msk [vmem:[%s4397_s25 + $0xe6] sm:$0x1] %vm549_vm3, %v3526_v26  ;;  %v3280_v34 = vcombine.high %v3276_v27, %v3276_v27  ;;  %3981 = vst.msk [vmem:[%s4397_s25 + $0x9d] sm:$0x1] %vm549_vm3, %v3279_v29  ;;  %v3462_v36 = vcombine.high %v3454_v16, %v3454_v16  ;;  %v3463_v37 = vcombine.high %v3461_v30, %v3461_v30 }
 0x2bf   : > { %3983 = vst.msk [vmem:[%s4397_s25 + $0xad] sm:$0x1] %vm549_vm3, %v3276_v27  ;;  %3984 = vst.msk [vmem:[%s4397_s25 + $0xb5] sm:$0x1] %vm549_vm3, %v3278_v28  ;;  %v3470_v38 = vrot.slane %v3454_v16, %v4391_v3  ;;  %v3543_v40 = vcombine.high %v3533_v31, %v3533_v31  ;;  %v3544_v41 = vcombine.high %v3540_v32, %v3540_v32 }
 0x2c0   : > { %4005 = vst.msk [vmem:[%s4397_s25 + $0xce] sm:$0x1] %vm549_vm3, %v3533_v31  ;;  %4006 = vst.msk [vmem:[%s4397_s25 + $0xd6] sm:$0x1] %vm549_vm3, %v3541_v33  ;;  %v3477_v42 = vrot.slane %v3461_v30, %v4391_v3  ;;  %v3711_v35 = vcombine.high %v4189_v22, %v4189_v22  ;;  %v3484_v43 = vrot.slane %v3462_v36, %v4391_v3 }
 0x2c1   : > { %4009 = vst.msk [vmem:[%s4397_s25 + $0xee] sm:$0x1] %vm549_vm3, %v3540_v32  ;;  %4010 = vst.msk [vmem:[%s4397_s25 + $0xf6] sm:$0x1] %vm549_vm3, %v3542_v18  ;;  %v3491_v44 = vrot.slane %v3463_v37, %v4391_v3  ;;  %v3492_v45 = vcombine.high %v3470_v38, %v3470_v38  ;;  %v3718_v46 = vrot.slane %v4189_v22, %v4391_v3 }
 0x2c2   : > { %3985 = vst.msk [vmem:[%s4397_s25 + $0xbd] sm:$0x1] %vm549_vm3, %v3280_v34  ;;  %3996 = vst.msk [vmem:[%s4397_s25 + $0x86] sm:$0x1] %vm549_vm3, %v3470_v38  ;;  %v3493_v47 = vcombine.high %v3477_v42, %v3477_v42  ;;  %v3725_v48 = vrot.slane %v3711_v35, %v4391_v3  ;;  %v3662_v49 = vcombine.high %v3651_v39, %v3651_v39 }
 0x2c3   : > { %4007 = vst.msk [vmem:[%s4397_s25 + $0xde] sm:$0x1] %vm549_vm3, %v3543_v40  ;;  %4011 = vst.msk [vmem:[%s4397_s25 + $0xfe] sm:$0x1] %vm549_vm3, %v3544_v41  ;;  %v3669_v51 = vrot.slane %v3651_v39, %v4391_v3  ;;  %v3494_v52 = vcombine.high %v3484_v43, %v3484_v43  ;;  %v3495_v50 = vcombine.high %v3491_v44, %v3491_v44 }
 0x2c4   : > { %4000 = vst.msk [vmem:[%s4397_s25 + $0xa6] sm:$0x1] %vm549_vm3, %v3477_v42  ;;  %3997 = vst.msk [vmem:[%s4397_s25 + $0x8e] sm:$0x1] %vm549_vm3, %v3484_v43  ;;  %v3726_v54 = vcombine.high %v3718_v46, %v3718_v46  ;;  %v3734_v55 = vrot.slane %v3718_v46, %v4391_v3  ;;  %v3727_v56 = vcombine.high %v3725_v48, %v3725_v48 }
 0x2c5   : > { %3998 = vst.msk [vmem:[%s4397_s25 + $0x96] sm:$0x1] %vm549_vm3, %v3492_v45  ;;  %4001 = vst.msk [vmem:[%s4397_s25 + $0xae] sm:$0x1] %vm549_vm3, %v3491_v44  ;;  %v3741_v57 = vrot.slane %v3725_v48, %v4391_v3  ;;  %v3676_v58 = vrot.slane %v3662_v49, %v4391_v3  ;;  %v3677_v60 = vcombine.high %v3669_v51, %v3669_v51 }
 0x2c6   : > { %4002 = vst.msk [vmem:[%s4397_s25 + $0xb6] sm:$0x1] %vm549_vm3, %v3493_v47  ;;  %3999 = vst.msk [vmem:[%s4397_s25 + $0x9e] sm:$0x1] %vm549_vm3, %v3494_v52  ;;  %v3748_v61 = vrot.slane %v3726_v54, %v4391_v3  ;;  %v3756_v62 = vcombine.high %v3734_v55, %v3734_v55  ;;  %v3685_v63 = vrot.slane %v3669_v51, %v4391_v3 }
 0x2c7   : > { %4003 = vst.msk [vmem:[%s4397_s25 + $0xbe] sm:$0x1] %vm549_vm3, %v3495_v50  ;;  %4022 = vst.msk [vmem:[%s4397_s25 + $0xc7] sm:$0x1] %vm549_vm3, %v3734_v55  ;;  %v3755_v53 = vrot.slane %v3727_v56, %v4391_v3  ;;  %v3757_v0 = vcombine.high %v3741_v57, %v3741_v57  ;;  %v3678_v1 = vcombine.high %v3676_v58, %v3676_v58 }
 0x2c8   : > { %4026 = vst.msk [vmem:[%s4397_s25 + $0xe7] sm:$0x1] %vm549_vm3, %v3741_v57  ;;  %v3692_v2 = vrot.slane %v3676_v58, %v4391_v3  ;;  %v3758_v59 = vcombine.high %v3748_v61, %v3748_v61  ;;  %4023 = vst.msk [vmem:[%s4397_s25 + $0xcf] sm:$0x1] %vm549_vm3, %v3748_v61  ;;  %v3699_v4 = vrot.slane %v3677_v60, %v4391_v3 }
 0x2c9   : > { %4024 = vst.msk [vmem:[%s4397_s25 + $0xd7] sm:$0x1] %vm549_vm3, %v3756_v62  ;;  %v3707_v6 = vcombine.high %v3685_v63, %v3685_v63  ;;  %4014 = vst.msk [vmem:[%s4397_s25 + $0x87] sm:$0x1] %vm549_vm3, %v3685_v63  ;;  %v3759_v7 = vcombine.high %v3755_v53, %v3755_v53  ;;  %v3706_v8 = vrot.slane %v3678_v1, %v4391_v3 }
 0x2ca   : > { %4027 = vst.msk [vmem:[%s4397_s25 + $0xef] sm:$0x1] %vm549_vm3, %v3755_v53  ;;  %4028 = vst.msk [vmem:[%s4397_s25 + $0xf7] sm:$0x1] %vm549_vm3, %v3757_v0  ;;  %v3708_v9 = vcombine.high %v3692_v2, %v3692_v2  ;;  %v3709_v10 = vcombine.high %v3699_v4, %v3699_v4 }
 0x2cb   : > { %4018 = vst.msk [vmem:[%s4397_s25 + $0xa7] sm:$0x1] %vm549_vm3, %v3692_v2  ;;  %4025 = vst.msk [vmem:[%s4397_s25 + $0xdf] sm:$0x1] %vm549_vm3, %v3758_v59  ;;  %v3710_v11 = vcombine.high %v3706_v8, %v3706_v8 }
 0x2cc   : > { %4015 = vst.msk [vmem:[%s4397_s25 + $0x8f] sm:$0x1] %vm549_vm3, %v3699_v4  ;;  %4016 = vst.msk [vmem:[%s4397_s25 + $0x97] sm:$0x1] %vm549_vm3, %v3707_v6 }
 0x2cd   : > { %4029 = vst.msk [vmem:[%s4397_s25 + $0xff] sm:$0x1] %vm549_vm3, %v3759_v7  ;;  %4019 = vst.msk [vmem:[%s4397_s25 + $0xaf] sm:$0x1] %vm549_vm3, %v3706_v8 }
 0x2ce   : > { %4020 = vst.msk [vmem:[%s4397_s25 + $0xb7] sm:$0x1] %vm549_vm3, %v3708_v9  ;;  %4017 = vst.msk [vmem:[%s4397_s25 + $0x9f] sm:$0x1] %vm549_vm3, %v3709_v10 }
 0x2cf   : > { %4021 = vst.msk [vmem:[%s4397_s25 + $0xbf] sm:$0x1] %vm549_vm3, %v3710_v11 }
 0x2d0 PF: > { %s14_s15 = sadd.s32 1, %s4233_s15  }
 0x2d1   : > { %p11_p5 = scmp.ge.s32.totalorder %s14_s15, 4  }
 0x2d3   :  { %13 = sbr.rel (!%p11_p5) target bundleno = 1 (0x1), region = 67 }

</bundles_post_ra>
